<compile_context>
chip_gen: v5e
topology: v5e:2x2
jax: 0.10.0
libtpu: 0.0.40
codegen_flags: <defaults>
</compile_context>

<pallas_src>
import jax
import jax.numpy as jnp
from jax.experimental import pallas as pl
from jax.experimental.pallas import tpu as pltpu

_NSTAT_MAX = 11  # [sum|LL3|, max|LL3|, max|LH3|, max|HL3|, max|HH3|,
                 #  max|LH2|, max|HL2|, max|HH2|, max|LH1|, max|HL1|, max|HH1|]


# --------------------------------------------------------------------------
# Boundary layout transforms (pure XLA reshape/transpose — one pass each)
# --------------------------------------------------------------------------
def _fwd_permute3(x):
    """3-level even/odd de-interleave of both spatial axes of (N, H, W)."""
    n, h, w = x.shape
    xr = x.reshape(n, h // 8, 2, 2, 2, w // 8, 2, 2, 2)
    #         axes: n,  qr, b2r, b1r, b0r,  qc, b2c, b1c, b0c   (b0 = LSB)
    xr = xr.transpose(0, 4, 3, 2, 1, 8, 7, 6, 5)
    return xr.reshape(n, h, w)


def _inv_permute(y, lev):
    """Undo `lev` levels of the even/odd de-interleave on (N, Hs, Ws)."""
    if lev == 0:
        return y
    n, hs, ws = y.shape
    f = 2 ** lev
    yr = y.reshape(n, *([2] * lev), hs // f, *([2] * lev), ws // f)
    row_axes = list(range(1, lev + 2))              # (b0, ..., b_{lev-1}, q)
    col_axes = list(range(lev + 2, 2 * lev + 3))
    perm = [0] + row_axes[::-1] + col_axes[::-1]    # -> (q, b_{lev-1}, ..., b0)
    return yr.transpose(perm).reshape(n, hs, ws)


def _pick_tile(n, h, w, budget_bytes=2 << 20):
    """Largest divisor of n whose (tn, H, W) f32 input slab stays <= budget."""
    per_n = h * w * 4
    cap = max(1, budget_bytes // per_n)
    tn = 1
    for d in range(1, n + 1):
        if n % d == 0 and d <= cap:
            tn = d
    return tn


# --------------------------------------------------------------------------
# In-kernel Haar helpers (permuted layout: phases are contiguous quadrants)
# --------------------------------------------------------------------------
def _dwt_quad(x, hh, ww):
    a = x[:, :hh, :ww]
    b = x[:, :hh, ww:]
    c = x[:, hh:, :ww]
    d = x[:, hh:, ww:]
    return (0.5 * (a + b + c + d), 0.5 * (a + b - c - d),
            0.5 * (a - b + c - d), 0.5 * (a - b - c + d))


def _idwt_quad(ll, lh, hl, hh):
    a = 0.5 * (ll + lh + hl + hh)
    b = 0.5 * (ll + lh - hl - hh)
    c = 0.5 * (ll - lh + hl - hh)
    d = 0.5 * (ll - lh - hl + hh)
    top = jnp.concatenate([a, b], axis=-1)
    bot = jnp.concatenate([c, d], axis=-1)
    return jnp.concatenate([top, bot], axis=-2)   # permuted-layout assembly


def _gated(g_ref, k, v):
    # where(), not multiply: a dropped band must not leak NaN/Inf.
    return jnp.where(g_ref[k] != 0, v, jnp.zeros_like(v))


# --------------------------------------------------------------------------
# Pass 1: fused 3-level analysis + stats kernel
# --------------------------------------------------------------------------
def _make_analysis_kernel(H, W, emit_l3, emit_l2, n_stat_levels):
    h1, w1 = H // 2, W // 2
    h2, w2 = H // 4, W // 4
    h3, w3 = H // 8, W // 8

    def kernel(x_ref, *out_refs):
        refs = list(out_refs)
        pos = 0
        l3_ref = l2_ref = None
        if emit_l3:
            l3_ref = refs[pos]; pos += 1
        if emit_l2:
            l2_ref = refs[pos]; pos += 1
        stats_ref = refs[pos]

        x = x_ref[...]                                   # (tn, H, W)
        ll1, lh1, hl1, hh1 = _dwt_quad(x, h1, w1)        # LL1 stays in VMEM
        ll2, lh2, hl2, hh2 = _dwt_quad(ll1, h2, w2)      # LL2 stays in VMEM
        if emit_l2:
            l2_ref[...] = jnp.concatenate([lh2, hl2, hh2], axis=-1)
        ll3, lh3, hl3, hh3 = _dwt_quad(ll2, h3, w3)
        if emit_l3:
            l3_ref[...] = jnp.concatenate([ll3, lh3, hl3, hh3], axis=-1)

        # Only the stats that this sr_ratio actually consumes (saves XLU work).
        vals = [jnp.sum(jnp.abs(ll3)), jnp.max(jnp.abs(ll3)),
                jnp.max(jnp.abs(lh3)), jnp.max(jnp.abs(hl3)), jnp.max(jnp.abs(hh3))]
        if n_stat_levels >= 2:
            vals += [jnp.max(jnp.abs(lh2)), jnp.max(jnp.abs(hl2)),
                     jnp.max(jnp.abs(hh2))]
        if n_stat_levels >= 3:
            vals += [jnp.max(jnp.abs(lh1)), jnp.max(jnp.abs(hl1)),
                     jnp.max(jnp.abs(hh1))]

        # Per-tile partial statistics, packed into row 0 of one (8,128) block.
        lane = jax.lax.broadcasted_iota(jnp.int32, (8, 128), 1)
        sub = jax.lax.broadcasted_iota(jnp.int32, (8, 128), 0)
        tile = jnp.zeros((8, 128), jnp.float32)
        for k, v in enumerate(vals):
            tile = jnp.where((sub == 0) & (lane == k), v, tile)
        stats_ref[...] = tile

    return kernel


def _run_analysis(xp, sr_ratio, tn):
    n, H, W = xp.shape
    h2, w2 = H // 4, W // 4
    h3, w3 = H // 8, W // 8
    nt = n // tn

    emit_l3 = sr_ratio in (4, 8)   # sr==2 recomputes in pass 2 -> stats only
    emit_l2 = sr_ratio == 4
    n_stat_levels = {8: 1, 4: 2, 2: 3}[sr_ratio]

    im = lambda i: (i, 0, 0)
    out_shapes, out_specs = [], []
    if emit_l3:
        out_shapes.append(jax.ShapeDtypeStruct((n, h3, 4 * w3), jnp.float32))
        out_specs.append(pl.BlockSpec((tn, h3, 4 * w3), im))
    if emit_l2:
        out_shapes.append(jax.ShapeDtypeStruct((n, h2, 3 * w2), jnp.float32))
        out_specs.append(pl.BlockSpec((tn, h2, 3 * w2), im))
    out_shapes.append(jax.ShapeDtypeStruct((nt * 8, 128), jnp.float32))
    out_specs.append(pl.BlockSpec((8, 128), lambda i: (i, 0)))

    outs = pl.pallas_call(
        _make_analysis_kernel(H, W, emit_l3, emit_l2, n_stat_levels),
        out_shape=tuple(out_shapes),
        grid_spec=pltpu.PrefetchScalarGridSpec(
            num_scalar_prefetch=0,
            grid=(nt,),
            in_specs=[pl.BlockSpec((tn, H, W), im)],
            out_specs=tuple(out_specs),
        ),
        compiler_params=pltpu.CompilerParams(
            dimension_semantics=("parallel",),
            vmem_limit_bytes=32 * 1024 * 1024,
        ),
    )(xp)
    if not isinstance(outs, (tuple, list)):
        outs = (outs,)
    return list(outs[:-1]), outs[-1]


# --------------------------------------------------------------------------
# Pass 2: fused gated synthesis kernel (depth / inputs depend on sr_ratio)
# --------------------------------------------------------------------------
def _make_synth_kernel(sr_ratio, H, W):
    h1, w1 = H // 2, W // 2
    h2, w2 = H // 4, W // 4
    h3, w3 = H // 8, W // 8

    def split3(v, w):
        return v[:, :, 0:w], v[:, :, w:2 * w], v[:, :, 2 * w:3 * w]

    def split_l3(v):
        return (v[:, :, 0:w3], v[:, :, w3:2 * w3],
                v[:, :, 2 * w3:3 * w3], v[:, :, 3 * w3:4 * w3])

    if sr_ratio == 8:
        def kernel(g_ref, l3_ref, out_ref):
            ll3, lh3, hl3, hh3 = split_l3(l3_ref[...])
            out_ref[...] = (ll3 + _gated(g_ref, 0, lh3)
                            + _gated(g_ref, 1, hl3) + _gated(g_ref, 2, hh3))
        return kernel

    if sr_ratio == 4:
        def kernel(g_ref, l3_ref, l2_ref, out_ref):
            ll3, lh3, hl3, hh3 = split_l3(l3_ref[...])
            y2 = _idwt_quad(ll3, _gated(g_ref, 0, lh3), _gated(g_ref, 1, hl3),
                            _gated(g_ref, 2, hh3))
            lh2, hl2, hh2 = split3(l2_ref[...], w2)
            out_ref[...] = (y2 + _gated(g_ref, 3, lh2)
                            + _gated(g_ref, 4, hl2) + _gated(g_ref, 5, hh2))
        return kernel

    # sr_ratio == 2: read the permuted input again and recompute the (cheap)
    # DWT tree in VMEM — avoids writing + re-reading the level-1 detail slab.
    def kernel(g_ref, x_ref, out_ref):
        x = x_ref[...]
        ll1, lh1, hl1, hh1 = _dwt_quad(x, h1, w1)
        ll2, lh2, hl2, hh2 = _dwt_quad(ll1, h2, w2)
        ll3, lh3, hl3, hh3 = _dwt_quad(ll2, h3, w3)
        y2 = _idwt_quad(ll3, _gated(g_ref, 0, lh3), _gated(g_ref, 1, hl3),
                        _gated(g_ref, 2, hh3))
        y1 = _idwt_quad(y2, _gated(g_ref, 3, lh2), _gated(g_ref, 4, hl2),
                        _gated(g_ref, 5, hh2))
        out_ref[...] = (y1 + _gated(g_ref, 6, lh1)
                        + _gated(g_ref, 7, hl1) + _gated(g_ref, 8, hh1))
    return kernel


def _run_synthesis(gates, inputs, sr_ratio, tn, H, W):
    n = inputs[0].shape[0]
    nt = n // tn
    h1, w1 = H // 2, W // 2
    h2, w2 = H // 4, W // 4
    h3, w3 = H // 8, W // 8

    im = lambda i, g: (i, 0, 0)  # scalar-prefetch ref is a trailing arg
    if sr_ratio == 8:
        in_specs = [pl.BlockSpec((tn, h3, 4 * w3), im)]
        out_shape = jax.ShapeDtypeStruct((n, h3, w3), jnp.float32)
        out_spec = pl.BlockSpec((tn, h3, w3), im)
    elif sr_ratio == 4:
        in_specs = [pl.BlockSpec((tn, h3, 4 * w3), im),
                    pl.BlockSpec((tn, h2, 3 * w2), im)]
        out_shape = jax.ShapeDtypeStruct((n, h2, w2), jnp.float32)
        out_spec = pl.BlockSpec((tn, h2, w2), im)
    else:  # sr_ratio == 2
        in_specs = [pl.BlockSpec((tn, H, W), im)]
        out_shape = jax.ShapeDtypeStruct((n, h1, w1), jnp.float32)
        out_spec = pl.BlockSpec((tn, h1, w1), im)

    return pl.pallas_call(
        _make_synth_kernel(sr_ratio, H, W),
        out_shape=out_shape,
        grid_spec=pltpu.PrefetchScalarGridSpec(
            num_scalar_prefetch=1,
            grid=(nt,),
            in_specs=tuple(in_specs),
            out_specs=out_spec,
        ),
        compiler_params=pltpu.CompilerParams(
            dimension_semantics=("parallel",),
            vmem_limit_bytes=32 * 1024 * 1024,
        ),
    )(gates, *inputs)


# --------------------------------------------------------------------------
# WaveletTree forward (tree_level=8; method 'root' or 'all')
# --------------------------------------------------------------------------
def wavelet_tree_forward(x, *, sr_ratio=1, tree_level=8, threshold=1.0,
                         use_thres=False, method='root'):
    """x: (B, C, H, W) NCHW, same as the PyTorch module."""
    if tree_level != 8:
        if tree_level == 4:
            # TODO(synk): tree_level==4 branch (2-level tree, std-based threshold) not implemented.
            raise NotImplementedError("tree_level=4 not implemented")
        return x
    if method not in ('root', 'all'):
        raise ValueError(f"unknown method {method!r}")
    if sr_ratio not in (2, 4, 8):
        return x  # PyTorch falls through with x unchanged

    b, c, h, w = x.shape
    assert h % 8 == 0 and w % 8 == 0, "3-level Haar needs H, W divisible by 8"
    n = b * c
    xf = x.reshape(n, h, w).astype(jnp.float32)
    xp = _fwd_permute3(xf)

    tn = _pick_tile(n, h, w)
    bands, stats = _run_analysis(xp, sr_ratio, tn)

    nt = n // tn
    p = stats.reshape(nt, 8, 128)[:, 0, :_NSTAT_MAX]      # (nt, 11)
    sum_ll3 = jnp.sum(p[:, 0])
    max_ll3 = jnp.max(p[:, 1])
    mx = jnp.max(p[:, 2:11], axis=0)                      # lh3 hl3 hh3 lh2 hl2 hh2 lh1 hl1 hh1

    if use_thres:
        thr = jnp.float32(threshold)
    else:
        h3, w3 = h // 8, w // 8
        mean_ll3 = sum_ll3 / jnp.float32(n * h3 * w3)
        # matches (mean|LL3| + 2**int(log2(max|LL3|))) / 4 ; int() truncates toward 0.
        # TODO(synk): max|LL3|==0 gives log2->-inf here (PyTorch int(log2(0)) would raise).
        thr = (mean_ll3 + 2.0 ** jnp.trunc(jnp.log2(max_ll3))) / 4.0

    gates = jnp.zeros((16,), jnp.int32)
    g3 = mx[0:3] > thr
    gates = gates.at[0:3].set(g3.astype(jnp.int32))
    if sr_ratio in (2, 4):
        g2 = mx[3:6] > (thr * 0.5)
        if method == 'root':
            g2 = g2 & g3
        gates = gates.at[3:6].set(g2.astype(jnp.int32))
    if sr_ratio == 2:
        g1 = mx[6:9] > (thr * 0.25)
        if method == 'root':
            g1 = g1 & g2
        gates = gates.at[6:9].set(g1.astype(jnp.int32))

    synth_inputs = bands if sr_ratio in (4, 8) else [xp]
    y = _run_synthesis(gates, synth_inputs, sr_ratio, tn, h, w)

    if sr_ratio == 8:
        out, hs, ws = y, h // 8, w // 8
    elif sr_ratio == 4:
        out, hs, ws = _inv_permute(y, 1), h // 4, w // 4
    else:
        out, hs, ws = _inv_permute(y, 2), h // 2, w // 2
    return out.reshape(b, c, hs, ws).astype(x.dtype)


# --------------------------------------------------------------------------
# Pure-JAX reference (natural layout) for the self-check
# --------------------------------------------------------------------------
def _ref_dwt(x):
    a = x[:, 0::2, 0::2]
    b = x[:, 0::2, 1::2]
    c = x[:, 1::2, 0::2]
    d = x[:, 1::2, 1::2]
    return (0.5 * (a + b + c + d), 0.5 * (a + b - c - d),
            0.5 * (a - b + c - d), 0.5 * (a - b - c + d))


def _ref_idwt(ll, lh, hl, hh):
    n, hh_, ww = ll.shape
    a = 0.5 * (ll + lh + hl + hh)
    b = 0.5 * (ll + lh - hl - hh)
    c = 0.5 * (ll - lh + hl - hh)
    d = 0.5 * (ll - lh - hl + hh)
    top = jnp.stack([a, b], -1).reshape(n, hh_, 2 * ww)
    bot = jnp.stack([c, d], -1).reshape(n, hh_, 2 * ww)
    return jnp.stack([top, bot], 2).reshape(n, 2 * hh_, 2 * ww)


def _ref_forward(x, sr_ratio, method='root', use_thres=False, threshold=1.0):
    b, c, h, w = x.shape
    xf = x.reshape(b * c, h, w).astype(jnp.float32)
    ll1, lh1, hl1, hh1 = _ref_dwt(xf)
    ll2, lh2, hl2, hh2 = _ref_dwt(ll1)
    ll3, lh3, hl3, hh3 = _ref_dwt(ll2)
    if use_thres:
        thr = jnp.float32(threshold)
    else:
        thr = (jnp.mean(jnp.abs(ll3))
               + 2.0 ** jnp.trunc(jnp.log2(jnp.max(jnp.abs(ll3))))) / 4.0
    mxf = lambda t: jnp.max(jnp.abs(t))
    z = lambda g, t: jnp.where(g, t, jnp.zeros_like(t))
    g_lh3, g_hl3, g_hh3 = mxf(lh3) > thr, mxf(hl3) > thr, mxf(hh3) > thr
    if sr_ratio == 8:
        y = ll3 + z(g_lh3, lh3) + z(g_hl3, hl3) + z(g_hh3, hh3)
        return y.reshape(b, c, h // 8, w // 8).astype(x.dtype)
    y = _ref_idwt(ll3, z(g_lh3, lh3), z(g_hl3, hl3), z(g_hh3, hh3))
    thr2 = thr / 2
    g_lh2, g_hl2, g_hh2 = mxf(lh2) > thr2, mxf(hl2) > thr2, mxf(hh2) > thr2
    if method == 'root':
        g_lh2, g_hl2, g_hh2 = g_lh2 & g_lh3, g_hl2 & g_hl3, g_hh2 & g_hh3
    if sr_ratio == 4:
        y = y + z(g_lh2, lh2) + z(g_hl2, hl2) + z(g_hh2, hh2)
        return y.reshape(b, c, h // 4, w // 4).astype(x.dtype)
    y = _ref_idwt(y, z(g_lh2, lh2), z(g_hl2, hl2), z(g_hh2, hh2))
    thr1 = thr2 / 2
    g_lh1, g_hl1, g_hh1 = mxf(lh1) > thr1, mxf(hl1) > thr1, mxf(hh1) > thr1
    if method == 'root':
        g_lh1, g_hl1, g_hh1 = g_lh1 & g_lh2, g_hl1 & g_hl2, g_hh1 & g_hh2
    y = y + z(g_lh1, lh1) + z(g_hl1, hl1) + z(g_hh1, hh1)
    return y.reshape(b, c, h // 2, w // 2).astype(x.dtype)


# --------------------------------------------------------------------------
if __name__ == "__main__":
    key = jax.random.PRNGKey(0)
    x = jax.random.normal(key, (2, 4, 32, 32), dtype=jnp.float32)

    expected = {2: (2, 4, 16, 16), 4: (2, 4, 8, 8), 8: (2, 4, 4, 4)}
    for sr in (2, 4, 8):
        out = jax.block_until_ready(
            wavelet_tree_forward(x, sr_ratio=sr, tree_level=8,
                                 method='root', use_thres=False))
        ref = jax.block_until_ready(_ref_forward(x, sr_ratio=sr, method='root'))
        assert out.shape == expected[sr], (sr, out.shape)
        assert jnp.allclose(out, ref, rtol=1e-5, atol=1e-5), f"mismatch sr={sr}"

    out_all = jax.block_until_ready(
        wavelet_tree_forward(x, sr_ratio=2, tree_level=8,
                             method='all', use_thres=False))
    ref_all = jax.block_until_ready(_ref_forward(x, sr_ratio=2, method='all'))
    assert jnp.allclose(out_all, ref_all, rtol=1e-5, atol=1e-5), "mismatch method=all"

    out_thr = jax.block_until_ready(
        wavelet_tree_forward(x, sr_ratio=4, tree_level=8,
                             method='all', use_thres=True, threshold=0.5))
    ref_thr = jax.block_until_ready(
        _ref_forward(x, sr_ratio=4, method='all', use_thres=True, threshold=0.5))
    assert jnp.allclose(out_thr, ref_thr, rtol=1e-5, atol=1e-5), "mismatch use_thres"

    print("KERNEL_OK")
</pallas_src>

<mosaic_0001>
module attributes {stable_mosaic.version = 11 : i64} {
  func.func @kernel(%arg0: i32, %arg1: memref<8x32x32xf32, #tpu.memory_space<vmem>>, %arg2: memref<8x128xf32, #tpu.memory_space<vmem>>) attributes {dimension_semantics = [#tpu.dimension_semantics<parallel>], iteration_bounds = array<i64: 1>, scalar_prefetch = 0 : i64, scratch_operands = 0 : i64, tpu.core_type = #tpu.core_type<tc>, window_params = [{transform_indices = @transform_0, window_bounds = array<i64: 8, 32, 32>}, {transform_indices = @transform_1, window_bounds = array<i64: 8, 128>}]} {
    %c0 = arith.constant 0 : index
    %c0_0 = arith.constant 0 : index
    %c0_1 = arith.constant 0 : index
    %0 = vector.load %arg1[%c0, %c0_0, %c0_1] : memref<8x32x32xf32, #tpu.memory_space<vmem>>, vector<8x32x32xf32>
    %1 = vector.extract_strided_slice %0 {offsets = [0, 0, 0], sizes = [8, 16, 16], strides = [1, 1, 1]} : vector<8x32x32xf32> to vector<8x16x16xf32>
    %2 = vector.extract_strided_slice %0 {offsets = [0, 0, 16], sizes = [8, 16, 16], strides = [1, 1, 1]} : vector<8x32x32xf32> to vector<8x16x16xf32>
    %3 = vector.extract_strided_slice %0 {offsets = [0, 16, 0], sizes = [8, 16, 16], strides = [1, 1, 1]} : vector<8x32x32xf32> to vector<8x16x16xf32>
    %4 = vector.extract_strided_slice %0 {offsets = [0, 16, 16], sizes = [8, 16, 16], strides = [1, 1, 1]} : vector<8x32x32xf32> to vector<8x16x16xf32>
    %5 = arith.addf %1, %2 : vector<8x16x16xf32>
    %6 = arith.addf %5, %3 : vector<8x16x16xf32>
    %7 = arith.addf %6, %4 : vector<8x16x16xf32>
    %cst = arith.constant 5.000000e-01 : f32
    %8 = vector.broadcast %cst : f32 to vector<8x16x16xf32>
    %9 = arith.mulf %8, %7 : vector<8x16x16xf32>
    %10 = arith.addf %1, %2 : vector<8x16x16xf32>
    %11 = arith.subf %10, %3 : vector<8x16x16xf32>
    %12 = arith.subf %11, %4 : vector<8x16x16xf32>
    %cst_2 = arith.constant 5.000000e-01 : f32
    %13 = vector.broadcast %cst_2 : f32 to vector<8x16x16xf32>
    %14 = arith.mulf %13, %12 : vector<8x16x16xf32>
    %15 = arith.subf %1, %2 : vector<8x16x16xf32>
    %16 = arith.addf %15, %3 : vector<8x16x16xf32>
    %17 = arith.subf %16, %4 : vector<8x16x16xf32>
    %cst_3 = arith.constant 5.000000e-01 : f32
    %18 = vector.broadcast %cst_3 : f32 to vector<8x16x16xf32>
    %19 = arith.mulf %18, %17 : vector<8x16x16xf32>
    %20 = arith.subf %1, %2 : vector<8x16x16xf32>
    %21 = arith.subf %20, %3 : vector<8x16x16xf32>
    %22 = arith.addf %21, %4 : vector<8x16x16xf32>
    %cst_4 = arith.constant 5.000000e-01 : f32
    %23 = vector.broadcast %cst_4 : f32 to vector<8x16x16xf32>
    %24 = arith.mulf %23, %22 : vector<8x16x16xf32>
    %25 = vector.extract_strided_slice %9 {offsets = [0, 0, 0], sizes = [8, 8, 8], strides = [1, 1, 1]} : vector<8x16x16xf32> to vector<8x8x8xf32>
    %26 = vector.extract_strided_slice %9 {offsets = [0, 0, 8], sizes = [8, 8, 8], strides = [1, 1, 1]} : vector<8x16x16xf32> to vector<8x8x8xf32>
    %27 = vector.extract_strided_slice %9 {offsets = [0, 8, 0], sizes = [8, 8, 8], strides = [1, 1, 1]} : vector<8x16x16xf32> to vector<8x8x8xf32>
    %28 = vector.extract_strided_slice %9 {offsets = [0, 8, 8], sizes = [8, 8, 8], strides = [1, 1, 1]} : vector<8x16x16xf32> to vector<8x8x8xf32>
    %29 = arith.addf %25, %26 : vector<8x8x8xf32>
    %30 = arith.addf %29, %27 : vector<8x8x8xf32>
    %31 = arith.addf %30, %28 : vector<8x8x8xf32>
    %cst_5 = arith.constant 5.000000e-01 : f32
    %32 = vector.broadcast %cst_5 : f32 to vector<8x8x8xf32>
    %33 = arith.mulf %32, %31 : vector<8x8x8xf32>
    %34 = arith.addf %25, %26 : vector<8x8x8xf32>
    %35 = arith.subf %34, %27 : vector<8x8x8xf32>
    %36 = arith.subf %35, %28 : vector<8x8x8xf32>
    %cst_6 = arith.constant 5.000000e-01 : f32
    %37 = vector.broadcast %cst_6 : f32 to vector<8x8x8xf32>
    %38 = arith.mulf %37, %36 : vector<8x8x8xf32>
    %39 = arith.subf %25, %26 : vector<8x8x8xf32>
    %40 = arith.addf %39, %27 : vector<8x8x8xf32>
    %41 = arith.subf %40, %28 : vector<8x8x8xf32>
    %cst_7 = arith.constant 5.000000e-01 : f32
    %42 = vector.broadcast %cst_7 : f32 to vector<8x8x8xf32>
    %43 = arith.mulf %42, %41 : vector<8x8x8xf32>
    %44 = arith.subf %25, %26 : vector<8x8x8xf32>
    %45 = arith.subf %44, %27 : vector<8x8x8xf32>
    %46 = arith.addf %45, %28 : vector<8x8x8xf32>
    %cst_8 = arith.constant 5.000000e-01 : f32
    %47 = vector.broadcast %cst_8 : f32 to vector<8x8x8xf32>
    %48 = arith.mulf %47, %46 : vector<8x8x8xf32>
    %49 = vector.extract_strided_slice %33 {offsets = [0, 0, 0], sizes = [8, 4, 4], strides = [1, 1, 1]} : vector<8x8x8xf32> to vector<8x4x4xf32>
    %50 = vector.extract_strided_slice %33 {offsets = [0, 0, 4], sizes = [8, 4, 4], strides = [1, 1, 1]} : vector<8x8x8xf32> to vector<8x4x4xf32>
    %51 = vector.extract_strided_slice %33 {offsets = [0, 4, 0], sizes = [8, 4, 4], strides = [1, 1, 1]} : vector<8x8x8xf32> to vector<8x4x4xf32>
    %52 = vector.extract_strided_slice %33 {offsets = [0, 4, 4], sizes = [8, 4, 4], strides = [1, 1, 1]} : vector<8x8x8xf32> to vector<8x4x4xf32>
    %53 = arith.addf %49, %50 : vector<8x4x4xf32>
    %54 = arith.addf %53, %51 : vector<8x4x4xf32>
    %55 = arith.addf %54, %52 : vector<8x4x4xf32>
    %cst_9 = arith.constant 5.000000e-01 : f32
    %56 = vector.broadcast %cst_9 : f32 to vector<8x4x4xf32>
    %57 = arith.mulf %56, %55 : vector<8x4x4xf32>
    %58 = arith.addf %49, %50 : vector<8x4x4xf32>
    %59 = arith.subf %58, %51 : vector<8x4x4xf32>
    %60 = arith.subf %59, %52 : vector<8x4x4xf32>
    %cst_10 = arith.constant 5.000000e-01 : f32
    %61 = vector.broadcast %cst_10 : f32 to vector<8x4x4xf32>
    %62 = arith.mulf %61, %60 : vector<8x4x4xf32>
    %63 = arith.subf %49, %50 : vector<8x4x4xf32>
    %64 = arith.addf %63, %51 : vector<8x4x4xf32>
    %65 = arith.subf %64, %52 : vector<8x4x4xf32>
    %cst_11 = arith.constant 5.000000e-01 : f32
    %66 = vector.broadcast %cst_11 : f32 to vector<8x4x4xf32>
    %67 = arith.mulf %66, %65 : vector<8x4x4xf32>
    %68 = arith.subf %49, %50 : vector<8x4x4xf32>
    %69 = arith.subf %68, %51 : vector<8x4x4xf32>
    %70 = arith.addf %69, %52 : vector<8x4x4xf32>
    %cst_12 = arith.constant 5.000000e-01 : f32
    %71 = vector.broadcast %cst_12 : f32 to vector<8x4x4xf32>
    %72 = arith.mulf %71, %70 : vector<8x4x4xf32>
    %73 = math.absf %57 : vector<8x4x4xf32>
    %74 = vector.shape_cast %73 : vector<8x4x4xf32> to vector<1x8x4x4xf32>
    %cst_13 = arith.constant dense<0.000000e+00> : vector<1xf32>
    %75 = vector.multi_reduction <add>, %74, %cst_13 [1, 2, 3] : vector<1x8x4x4xf32> to vector<1xf32>
    %76 = vector.shape_cast %75 : vector<1xf32> to vector<1x1x1x1xf32>
    %77 = vector.extract %76[0, 0, 0, 0] : f32 from vector<1x1x1x1xf32>
    %78 = math.absf %57 : vector<8x4x4xf32>
    %79 = vector.shape_cast %78 : vector<8x4x4xf32> to vector<1x8x4x4xf32>
    %cst_14 = arith.constant dense<0xFF800000> : vector<1xf32>
    %80 = vector.multi_reduction <maximumf>, %79, %cst_14 [1, 2, 3] : vector<1x8x4x4xf32> to vector<1xf32>
    %81 = vector.shape_cast %80 : vector<1xf32> to vector<1x1x1x1xf32>
    %82 = vector.extract %81[0, 0, 0, 0] : f32 from vector<1x1x1x1xf32>
    %83 = math.absf %62 : vector<8x4x4xf32>
    %84 = vector.shape_cast %83 : vector<8x4x4xf32> to vector<1x8x4x4xf32>
    %cst_15 = arith.constant dense<0xFF800000> : vector<1xf32>
    %85 = vector.multi_reduction <maximumf>, %84, %cst_15 [1, 2, 3] : vector<1x8x4x4xf32> to vector<1xf32>
    %86 = vector.shape_cast %85 : vector<1xf32> to vector<1x1x1x1xf32>
    %87 = vector.extract %86[0, 0, 0, 0] : f32 from vector<1x1x1x1xf32>
    %88 = math.absf %67 : vector<8x4x4xf32>
    %89 = vector.shape_cast %88 : vector<8x4x4xf32> to vector<1x8x4x4xf32>
    %cst_16 = arith.constant dense<0xFF800000> : vector<1xf32>
    %90 = vector.multi_reduction <maximumf>, %89, %cst_16 [1, 2, 3] : vector<1x8x4x4xf32> to vector<1xf32>
    %91 = vector.shape_cast %90 : vector<1xf32> to vector<1x1x1x1xf32>
    %92 = vector.extract %91[0, 0, 0, 0] : f32 from vector<1x1x1x1xf32>
    %93 = math.absf %72 : vector<8x4x4xf32>
    %94 = vector.shape_cast %93 : vector<8x4x4xf32> to vector<1x8x4x4xf32>
    %cst_17 = arith.constant dense<0xFF800000> : vector<1xf32>
    %95 = vector.multi_reduction <maximumf>, %94, %cst_17 [1, 2, 3] : vector<1x8x4x4xf32> to vector<1xf32>
    %96 = vector.shape_cast %95 : vector<1xf32> to vector<1x1x1x1xf32>
    %97 = vector.extract %96[0, 0, 0, 0] : f32 from vector<1x1x1x1xf32>
    %98 = math.absf %38 : vector<8x8x8xf32>
    %99 = vector.shape_cast %98 : vector<8x8x8xf32> to vector<1x8x8x8xf32>
    %cst_18 = arith.constant dense<0xFF800000> : vector<1xf32>
    %100 = vector.multi_reduction <maximumf>, %99, %cst_18 [1, 2, 3] : vector<1x8x8x8xf32> to vector<1xf32>
    %101 = vector.shape_cast %100 : vector<1xf32> to vector<1x1x1x1xf32>
    %102 = vector.extract %101[0, 0, 0, 0] : f32 from vector<1x1x1x1xf32>
    %103 = math.absf %43 : vector<8x8x8xf32>
    %104 = vector.shape_cast %103 : vector<8x8x8xf32> to vector<1x8x8x8xf32>
    %cst_19 = arith.constant dense<0xFF800000> : vector<1xf32>
    %105 = vector.multi_reduction <maximumf>, %104, %cst_19 [1, 2, 3] : vector<1x8x8x8xf32> to vector<1xf32>
    %106 = vector.shape_cast %105 : vector<1xf32> to vector<1x1x1x1xf32>
    %107 = vector.extract %106[0, 0, 0, 0] : f32 from vector<1x1x1x1xf32>
    %108 = math.absf %48 : vector<8x8x8xf32>
    %109 = vector.shape_cast %108 : vector<8x8x8xf32> to vector<1x8x8x8xf32>
    %cst_20 = arith.constant dense<0xFF800000> : vector<1xf32>
    %110 = vector.multi_reduction <maximumf>, %109, %cst_20 [1, 2, 3] : vector<1x8x8x8xf32> to vector<1xf32>
    %111 = vector.shape_cast %110 : vector<1xf32> to vector<1x1x1x1xf32>
    %112 = vector.extract %111[0, 0, 0, 0] : f32 from vector<1x1x1x1xf32>
    %113 = math.absf %14 : vector<8x16x16xf32>
    %114 = vector.shape_cast %113 : vector<8x16x16xf32> to vector<1x8x16x16xf32>
    %cst_21 = arith.constant dense<0xFF800000> : vector<1xf32>
    %115 = vector.multi_reduction <maximumf>, %114, %cst_21 [1, 2, 3] : vector<1x8x16x16xf32> to vector<1xf32>
    %116 = vector.shape_cast %115 : vector<1xf32> to vector<1x1x1x1xf32>
    %117 = vector.extract %116[0, 0, 0, 0] : f32 from vector<1x1x1x1xf32>
    %118 = math.absf %19 : vector<8x16x16xf32>
    %119 = vector.shape_cast %118 : vector<8x16x16xf32> to vector<1x8x16x16xf32>
    %cst_22 = arith.constant dense<0xFF800000> : vector<1xf32>
    %120 = vector.multi_reduction <maximumf>, %119, %cst_22 [1, 2, 3] : vector<1x8x16x16xf32> to vector<1xf32>
    %121 = vector.shape_cast %120 : vector<1xf32> to vector<1x1x1x1xf32>
    %122 = vector.extract %121[0, 0, 0, 0] : f32 from vector<1x1x1x1xf32>
    %123 = math.absf %24 : vector<8x16x16xf32>
    %124 = vector.shape_cast %123 : vector<8x16x16xf32> to vector<1x8x16x16xf32>
    %cst_23 = arith.constant dense<0xFF800000> : vector<1xf32>
    %125 = vector.multi_reduction <maximumf>, %124, %cst_23 [1, 2, 3] : vector<1x8x16x16xf32> to vector<1xf32>
    %126 = vector.shape_cast %125 : vector<1xf32> to vector<1x1x1x1xf32>
    %127 = vector.extract %126[0, 0, 0, 0] : f32 from vector<1x1x1x1xf32>
    %128 = tpu.iota {dimensions = array<i32: 1>} : vector<8x128xi32>
    %129 = tpu.iota {dimensions = array<i32: 0>} : vector<8x128xi32>
    %cst_24 = arith.constant 0.000000e+00 : f32
    %130 = vector.broadcast %cst_24 : f32 to vector<8x128xf32>
    %c0_i32 = arith.constant 0 : i32
    %131 = vector.broadcast %c0_i32 : i32 to vector<8x128xi32>
    %132 = arith.cmpi eq, %129, %131 : vector<8x128xi32>
    %c0_i32_25 = arith.constant 0 : i32
    %133 = vector.broadcast %c0_i32_25 : i32 to vector<8x128xi32>
    %134 = arith.cmpi eq, %128, %133 : vector<8x128xi32>
    %135 = arith.andi %132, %134 : vector<8x128xi1>
    %136 = vector.broadcast %77 : f32 to vector<8x128xf32>
    %137 = arith.select %135, %136, %130 : vector<8x128xi1>, vector<8x128xf32>
    %c0_i32_26 = arith.constant 0 : i32
    %138 = vector.broadcast %c0_i32_26 : i32 to vector<8x128xi32>
    %139 = arith.cmpi eq, %129, %138 : vector<8x128xi32>
    %c1_i32 = arith.constant 1 : i32
    %140 = vector.broadcast %c1_i32 : i32 to vector<8x128xi32>
    %141 = arith.cmpi eq, %128, %140 : vector<8x128xi32>
    %142 = arith.andi %139, %141 : vector<8x128xi1>
    %143 = vector.broadcast %82 : f32 to vector<8x128xf32>
    %144 = arith.select %142, %143, %137 : vector<8x128xi1>, vector<8x128xf32>
    %c0_i32_27 = arith.constant 0 : i32
    %145 = vector.broadcast %c0_i32_27 : i32 to vector<8x128xi32>
    %146 = arith.cmpi eq, %129, %145 : vector<8x128xi32>
    %c2_i32 = arith.constant 2 : i32
    %147 = vector.broadcast %c2_i32 : i32 to vector<8x128xi32>
    %148 = arith.cmpi eq, %128, %147 : vector<8x128xi32>
    %149 = arith.andi %146, %148 : vector<8x128xi1>
    %150 = vector.broadcast %87 : f32 to vector<8x128xf32>
    %151 = arith.select %149, %150, %144 : vector<8x128xi1>, vector<8x128xf32>
    %c0_i32_28 = arith.constant 0 : i32
    %152 = vector.broadcast %c0_i32_28 : i32 to vector<8x128xi32>
    %153 = arith.cmpi eq, %129, %152 : vector<8x128xi32>
    %c3_i32 = arith.constant 3 : i32
    %154 = vector.broadcast %c3_i32 : i32 to vector<8x128xi32>
    %155 = arith.cmpi eq, %128, %154 : vector<8x128xi32>
    %156 = arith.andi %153, %155 : vector<8x128xi1>
    %157 = vector.broadcast %92 : f32 to vector<8x128xf32>
    %158 = arith.select %156, %157, %151 : vector<8x128xi1>, vector<8x128xf32>
    %c0_i32_29 = arith.constant 0 : i32
    %159 = vector.broadcast %c0_i32_29 : i32 to vector<8x128xi32>
    %160 = arith.cmpi eq, %129, %159 : vector<8x128xi32>
    %c4_i32 = arith.constant 4 : i32
    %161 = vector.broadcast %c4_i32 : i32 to vector<8x128xi32>
    %162 = arith.cmpi eq, %128, %161 : vector<8x128xi32>
    %163 = arith.andi %160, %162 : vector<8x128xi1>
    %164 = vector.broadcast %97 : f32 to vector<8x128xf32>
    %165 = arith.select %163, %164, %158 : vector<8x128xi1>, vector<8x128xf32>
    %c0_i32_30 = arith.constant 0 : i32
    %166 = vector.broadcast %c0_i32_30 : i32 to vector<8x128xi32>
    %167 = arith.cmpi eq, %129, %166 : vector<8x128xi32>
    %c5_i32 = arith.constant 5 : i32
    %168 = vector.broadcast %c5_i32 : i32 to vector<8x128xi32>
    %169 = arith.cmpi eq, %128, %168 : vector<8x128xi32>
    %170 = arith.andi %167, %169 : vector<8x128xi1>
    %171 = vector.broadcast %102 : f32 to vector<8x128xf32>
    %172 = arith.select %170, %171, %165 : vector<8x128xi1>, vector<8x128xf32>
    %c0_i32_31 = arith.constant 0 : i32
    %173 = vector.broadcast %c0_i32_31 : i32 to vector<8x128xi32>
    %174 = arith.cmpi eq, %129, %173 : vector<8x128xi32>
    %c6_i32 = arith.constant 6 : i32
    %175 = vector.broadcast %c6_i32 : i32 to vector<8x128xi32>
    %176 = arith.cmpi eq, %128, %175 : vector<8x128xi32>
    %177 = arith.andi %174, %176 : vector<8x128xi1>
    %178 = vector.broadcast %107 : f32 to vector<8x128xf32>
    %179 = arith.select %177, %178, %172 : vector<8x128xi1>, vector<8x128xf32>
    %c0_i32_32 = arith.constant 0 : i32
    %180 = vector.broadcast %c0_i32_32 : i32 to vector<8x128xi32>
    %181 = arith.cmpi eq, %129, %180 : vector<8x128xi32>
    %c7_i32 = arith.constant 7 : i32
    %182 = vector.broadcast %c7_i32 : i32 to vector<8x128xi32>
    %183 = arith.cmpi eq, %128, %182 : vector<8x128xi32>
    %184 = arith.andi %181, %183 : vector<8x128xi1>
    %185 = vector.broadcast %112 : f32 to vector<8x128xf32>
    %186 = arith.select %184, %185, %179 : vector<8x128xi1>, vector<8x128xf32>
    %c0_i32_33 = arith.constant 0 : i32
    %187 = vector.broadcast %c0_i32_33 : i32 to vector<8x128xi32>
    %188 = arith.cmpi eq, %129, %187 : vector<8x128xi32>
    %c8_i32 = arith.constant 8 : i32
    %189 = vector.broadcast %c8_i32 : i32 to vector<8x128xi32>
    %190 = arith.cmpi eq, %128, %189 : vector<8x128xi32>
    %191 = arith.andi %188, %190 : vector<8x128xi1>
    %192 = vector.broadcast %117 : f32 to vector<8x128xf32>
    %193 = arith.select %191, %192, %186 : vector<8x128xi1>, vector<8x128xf32>
    %c0_i32_34 = arith.constant 0 : i32
    %194 = vector.broadcast %c0_i32_34 : i32 to vector<8x128xi32>
    %195 = arith.cmpi eq, %129, %194 : vector<8x128xi32>
    %c9_i32 = arith.constant 9 : i32
    %196 = vector.broadcast %c9_i32 : i32 to vector<8x128xi32>
    %197 = arith.cmpi eq, %128, %196 : vector<8x128xi32>
    %198 = arith.andi %195, %197 : vector<8x128xi1>
    %199 = vector.broadcast %122 : f32 to vector<8x128xf32>
    %200 = arith.select %198, %199, %193 : vector<8x128xi1>, vector<8x128xf32>
    %c0_i32_35 = arith.constant 0 : i32
    %201 = vector.broadcast %c0_i32_35 : i32 to vector<8x128xi32>
    %202 = arith.cmpi eq, %129, %201 : vector<8x128xi32>
    %c10_i32 = arith.constant 10 : i32
    %203 = vector.broadcast %c10_i32 : i32 to vector<8x128xi32>
    %204 = arith.cmpi eq, %128, %203 : vector<8x128xi32>
    %205 = arith.andi %202, %204 : vector<8x128xi1>
    %206 = vector.broadcast %127 : f32 to vector<8x128xf32>
    %207 = arith.select %205, %206, %200 : vector<8x128xi1>, vector<8x128xf32>
    %c0_36 = arith.constant 0 : index
    %c0_37 = arith.constant 0 : index
    %208 = vector.load %arg2[%c0_36, %c0_37] : memref<8x128xf32, #tpu.memory_space<vmem>>, vector<8x128xf32>
    tpu.vector_store %arg2[%c0_36, %c0_37], %207 {strides = array<i32>} : memref<8x128xf32, #tpu.memory_space<vmem>>, vector<8x128xf32>,
    return
  }
  func.func @transform_0(%arg0: i32) -> (i32, i32, i32) {
    %c0_i32 = arith.constant 0 : i32
    %c0_i32_0 = arith.constant 0 : i32
    %c0_i32_1 = arith.constant 0 : i32
    return %arg0, %c0_i32, %c0_i32_0 : i32, i32, i32
  }
  func.func @transform_1(%arg0: i32) -> (i32, i32) {
    %c0_i32 = arith.constant 0 : i32
    %c0_i32_0 = arith.constant 0 : i32
    return %arg0, %c0_i32 : i32, i32
  }
}

</mosaic_0001>

<bundles_post_ra>
// kernel: tpu_custom_call.1
= control target key start
LH: loop header
LB: loop body
LE: loop exit
PB: predicated region body
PF: predicated region fallthrough
CT: control target
= control target key end

     0   :  { %6 = vsyncpa [#allocation3], 0  ;;  %s2477_s0 = inlined_call_operand.hbm [shape: f32[8,32,32], index: 0, kind: input, shape index: {}]   ;;  %s2478_s1 = inlined_call_operand.hbm [shape: f32[8,128], index: 1, kind: output, shape index: {}]  }
   0x1   :  { %7 = vsyncpa [#allocation4], 0  ;;  %s12_s8 = sshll.u32 %s2477_s0, 4  ;;  %s1336_s9 = smov [#allocation2]   ;;  %s13_s8 = int_to_ptr.hbm [resolvable:$true] %s12_s8 }
   0x2   :  { %s14_s10 = sshll.u32 %s1336_s9, 4  ;;  %s1337_s11 = smov 128   ;;  %s15_s10 = int_to_ptr.vmem [resolvable:$true] %s14_s10 }
   0x3   :  { %s1338_s12 = smov 8  }
   0x4   :  { %20 = dma.hbm_to_vmem [thread:$0]  %s13_s8, 4096, %s15_s10, [#allocation3], %s1337_s11, %s1337_s11, %s1338_s12  }
   0x5   :  { %1332 = dma.done.wait [#allocation3], 4096  }
   0x6   :  { %1333 = vsyncadd [#allocation3], 4294963200  ;;  %v1356_v0 = vld [vmem:[#allocation2 + $0x40] sm:$0xff]  ;;  %v1360_v2 = vld [vmem:[#allocation2 + $0x28] sm:$0xff]  ;;  %s1339_s13 = smov 112   ;;  %vm1035_vm0 = vcmask 130048  }
   0x7   :  { %v1358_v1 = vld [vmem:[#allocation2] sm:$0xff]  ;;  %81 = vrot.lane.b32.xlu1 %v1356_v0, %s1339_s13  ;;  %79 = vrot.lane.b32.xlu2 %v1360_v2, %s1339_s13  ;;  %v1368_v3 = vld [vmem:[#allocation2 + $0x8] sm:$0xff]  ;;  %v1380_v6 = vld [vmem:[#allocation2 + $0x30] sm:$0xff]  ;;  %s1340_s0 = smov 120   ;;  %s1341_s14 = smov 124   ;;  %vm930_vm1 = vcmask 64512  }
   0x8   :  { %73 = vrot.lane.b32.xlu0 %v1358_v1, %s1339_s13  ;;  %v1370_v4 = vld [vmem:[#allocation2 + $0x20] sm:$0xff]  ;;  %v1382_v7 = vld [vmem:[#allocation2 + $0x10] sm:$0xff]  ;;  %v1384_v8 = vld [vmem:[#allocation2 + $0x48] sm:$0xff]  ;;  %vm777_vm2 = vcmask 27648   ;;  %s1342_s25 = smov [#allocation5]   ;;  %s1245_s29 = sshll.u32 %s2478_s1, 4  ;;  %s1246_s29 = int_to_ptr.hbm [resolvable:$true] %s1245_s29 }
   0x9   :  { %v1372_v5 = vld [vmem:[#allocation2 + $0x60] sm:$0xff]  ;;  %v1392_v9 = vld [vmem:[#allocation2 + $0x50] sm:$0xff]  ;;  %v1396_v11 = vld [vmem:[#allocation2 + $0x68] sm:$0xff]  ;;  %s1243_s26 = sshll.u32 %s1342_s25, 4  ;;  %s1244_s26 = int_to_ptr.vmem [resolvable:$true] %s1243_s26 }
   0xa   :  { %v1394_v10 = vld [vmem:[#allocation2 + $0x80] sm:$0xff]  ;;  %v1404_v12 = vld [vmem:[#allocation2 + $0x18] sm:$0xff]  ;;  %v1418_v16 = vld [vmem:[#allocation2 + $0x70] sm:$0xff] }
   0xb   :  { %v1406_v13 = vld [vmem:[#allocation2 + $0xa0] sm:$0xff]  ;;  %v1408_v14 = vld [vmem:[#allocation2 + $0x38] sm:$0xff]  ;;  %v1430_v19 = vld [vmem:[#allocation2 + $0x88] sm:$0xff] }
   0xc   :  { %v1416_v15 = vld [vmem:[#allocation2 + $0xc0] sm:$0xff]  ;;  %v1428_v18 = vld [vmem:[#allocation2 + $0x58] sm:$0xff]  ;;  %v1432_v20 = vld [vmem:[#allocation2 + $0x90] sm:$0xff] }
   0xd   :  { %v1420_v17 = vld [vmem:[#allocation2 + $0xe0] sm:$0xff]  ;;  %v1440_v21 = vld [vmem:[#allocation2 + $0x78] sm:$0xff]  ;;  %v1442_v22 = vld [vmem:[#allocation2 + $0xa8] sm:$0xff] }
   0xe   :  { %2501 = vst [vmem:[#allocation8_spill] sm:$0xff] %v1442_v22  ;;  %v1444_v23 = vld [vmem:[#allocation2 + $0xb0] sm:$0xff]  ;;  %v1452_v24 = vld [vmem:[#allocation2 + $0xe8] sm:$0xff]  ;;  %v1464_v27 = vld [vmem:[#allocation2 + $0x98] sm:$0xff] }
   0xf   :  { %75 = vrot.lane.b32.xlu1 %v1368_v3, %s1339_s13  ;;  %85 = vrot.lane.b32.xlu2 %v1372_v5, %s1339_s13  ;;  %2502 = vst [vmem:[#allocation9_spill] sm:$0xff] %v1452_v24  ;;  %v1454_v25 = vld [vmem:[#allocation2 + $0xc8] sm:$0xff]  ;;  %v1456_v26 = vld [vmem:[#allocation2 + $0xd0] sm:$0xff]  ;;  %v1468_v29 = vld [vmem:[#allocation2 + $0xb8] sm:$0xff] }
  0x10   :  { %77 = vrot.lane.b32.xlu0 %v1370_v4, %s1339_s13  ;;  %2503 = vst [vmem:[#allocation10_spill] sm:$0xff] %v1454_v25  ;;  %v1466_v28 = vld [vmem:[#allocation2 + $0xf0] sm:$0xff]  ;;  %v1476_v30 = vld [vmem:[#allocation2 + $0xf8] sm:$0xff] }
  0x11   :  { %2504 = vst [vmem:[#allocation11_spill] sm:$0xff] %v1468_v29  ;;  %v1478_v31 = vld [vmem:[#allocation2 + $0xd8] sm:$0xff] }
  0x12   :  { %2505 = vst [vmem:[#allocation12_spill] sm:$0xff] %v1476_v30 }
  0x13   :  { %2506 = vst [vmem:[#allocation13_spill] sm:$0xff] %v1478_v31 }
  0x17   :  { %173 = vrot.lane.b32.xlu1 %v1380_v6, %s1339_s13  ;;  %83 = vrot.lane.b32.xlu2 %v1384_v8, %s1339_s13 }
  0x18   :  { %169 = vrot.lane.b32.xlu0 %v1382_v7, %s1339_s13 }
  0x1f   :  { %177 = vrot.lane.b32.xlu1 %v1392_v9, %s1339_s13  ;;  %87 = vrot.lane.b32.xlu2 %v1396_v11, %s1339_s13 }
  0x20   :  { %89 = vrot.lane.b32.xlu0 %v1394_v10, %s1339_s13 }
  0x27   :  { %171 = vrot.lane.b32.xlu1 %v1404_v12, %s1339_s13  ;;  %175 = vrot.lane.b32.xlu2 %v1408_v14, %s1339_s13 }
  0x28   :  { %93 = vrot.lane.b32.xlu0 %v1406_v13, %s1339_s13 }
  0x2f   :  { %97 = vrot.lane.b32.xlu1 %v1416_v15, %s1339_s13  ;;  %101 = vrot.lane.b32.xlu2 %v1420_v17, %s1339_s13 }
  0x30   :  { %181 = vrot.lane.b32.xlu0 %v1418_v16, %s1339_s13 }
  0x37   :  { %179 = vrot.lane.b32.xlu1 %v1428_v18, %s1339_s13  ;;  %185 = vrot.lane.b32.xlu2 %v1432_v20, %s1339_s13 }
  0x38   :  { %91 = vrot.lane.b32.xlu0 %v1430_v19, %s1339_s13 }
  0x3f   :  { %183 = vrot.lane.b32.xlu1 %v1440_v21, %s1339_s13  ;;  %189 = vrot.lane.b32.xlu2 %v1444_v23, %s1339_s13 }
  0x40   :  { %95 = vrot.lane.b32.xlu0 %v1442_v22, %s1339_s13 }
  0x47   :  { %103 = vrot.lane.b32.xlu1 %v1452_v24, %s1339_s13  ;;  %193 = vrot.lane.b32.xlu2 %v1456_v26, %s1339_s13 }
  0x48   :  { %99 = vrot.lane.b32.xlu0 %v1454_v25, %s1339_s13 }
  0x4f   :  { %187 = vrot.lane.b32.xlu1 %v1464_v27, %s1339_s13  ;;  %191 = vrot.lane.b32.xlu2 %v1468_v29, %s1339_s13 }
  0x50   :  { %197 = vrot.lane.b32.xlu0 %v1466_v28, %s1339_s13 }
  0x57   :  { %199 = vrot.lane.b32.xlu1 %v1476_v30, %s1339_s13 }
  0x58   :  { %195 = vrot.lane.b32.xlu0 %v1478_v31, %s1339_s13 }
  0x61   :  { %v80_v32 = vpop.permute.xlu2 %79 }
  0x62   :  { %v124_v33 = vadd.f32 %v80_v32, %v1360_v2  ;;  %v300_v34 = vsub.f32 %v1360_v2, %v80_v32 }
  0x64   :  { %v252_v35 = vsub.f32 %v124_v33, %v1408_v14  ;;  %v316_v36 = vadd.f32 %v300_v34, %v1408_v14  ;;  %v364_v37 = vsub.f32 %v300_v34, %v1408_v14  ;;  %v140_v60 = vadd.f32 %v124_v33, %v1408_v14 }
  0x69   :  { %v86_v38 = vpop.permute.xlu2 %85 }
  0x6a   :  { %v1490_v39 = vadd.f32 %v86_v38, %v1372_v5  ;;  %v1493_v40 = vsub.f32 %v1372_v5, %v86_v38 }
  0x6c   :  { %v1499_v42 = vadd.f32 %v1493_v40, %v1418_v16  ;;  %v1541_v2 = vadd.f32 %v1490_v39, %v1418_v16 }
  0x71   :  { %v84_v44 = vpop.permute.xlu2 %83 }
  0x72   :  { %v1504_v45 = vadd.f32 %v84_v44, %v1384_v8  ;;  %v1507_v46 = vsub.f32 %v1384_v8, %v84_v44 }
  0x74   :  { %v1513_v48 = vadd.f32 %v1507_v46, %v1428_v18  ;;  %v1545_v5 = vadd.f32 %v1504_v45, %v1428_v18 }
  0x79   :  { %v82_v50 = vpop.permute.xlu1 %81  ;;  %v88_v52 = vpop.permute.xlu2 %87 }
  0x7a   :  { %v74_v51 = vpop.permute.xlu0 %73  ;;  %v1518_v53 = vadd.f32 %v88_v52, %v1396_v11  ;;  %v1521_v54 = vsub.f32 %v1396_v11, %v88_v52  ;;  %v1524_v55 = vadd.f32 %v82_v50, %v1356_v0  ;;  %v1535_v59 = vsub.f32 %v1356_v0, %v82_v50 }
  0x7b   :  { %v121_v61 = vadd.f32 %v74_v51, %v1358_v1  ;;  %v297_v0 = vsub.f32 %v1358_v1, %v74_v51 }
  0x7c   :  { %2507 = vst [vmem:[#allocation14_spill] sm:$0xff] %v1521_v54  ;;  %v1530_v57 = vadd.f32 %v1521_v54, %v1440_v21  ;;  %v1549_v8 = vadd.f32 %v1524_v55, %v1392_v9  ;;  %v1559_v44 = vadd.f32 %v1535_v59, %v1392_v9 }
  0x7d   :  { %v137_v52 = vadd.f32 %v121_v61, %v1382_v7  ;;  %v313_v47 = vadd.f32 %v297_v0, %v1382_v7 }
  0x81   :  { %v76_v62 = vpop.permute.xlu1 %75  ;;  %v176_v11 = vpop.permute.xlu2 %175 }
  0x82   :  { %v78_v63 = vpop.permute.xlu0 %77  ;;  %v1553_v14 = vadd.f32 %v76_v62, %v1368_v3  ;;  %v268_v32 = vsub.f32 %v252_v35, %v176_v11  ;;  %v332_v33 = vsub.f32 %v316_v36, %v176_v11  ;;  %v380_v34 = vadd.f32 %v364_v37, %v176_v11 }
  0x83   :  { %v1562_v50 = vsub.f32 %v1368_v3, %v76_v62  ;;  %v123_v1 = vadd.f32 %v78_v63, %v1370_v4  ;;  %v299_v35 = vsub.f32 %v1370_v4, %v78_v63  ;;  %v220_v36 = vadd.f32 %v176_v11, %v140_v60 }
  0x84   :  { %v249_v37 = vsub.f32 %v121_v61, %v1382_v7  ;;  %v284_v58 = vmul.f32 0.5, %v268_v32  ;;  %v348_v56 = vmul.f32 0.5, %v332_v33  ;;  %v396_v49 = vmul.f32 0.5, %v380_v34 }
  0x85   :  { %v361_v3 = vsub.f32 %v297_v0, %v1382_v7  ;;  %v1574_v62 = vadd.f32 %v1518_v53, %v1440_v21  ;;  %v1578_v43 = vadd.f32 %v1553_v14, %v1404_v12  ;;  %v1584_v60 = vadd.f32 %v1562_v50, %v1404_v12 }
  0x86   :  { %v251_v7 = vsub.f32 %v123_v1, %v1380_v6  ;;  %v139_v63 = vadd.f32 %v123_v1, %v1380_v6  ;;  %v315_v0 = vadd.f32 %v299_v35, %v1380_v6  ;;  %v363_v11 = vsub.f32 %v299_v35, %v1380_v6 }
  0x87   :  { %v1592_v32 = vmul.f32 0.5, %v220_v36  ;;  %v1022_v41 = vand.u32 2147483647, %v284_v58  ;;  %v1079_v4 = vand.u32 2147483647, %v348_v56 }
  0x88   :  { %v1135_v51 = vand.u32 2147483647, %v396_v49 }
  0x89   :  { %2508 = vst [vmem:[#allocation15_spill] sm:$0xff] %v1592_v32  ;;  %v174_v33 = vpop.permute.xlu1 %173  ;;  %v102_v31 = vpop.permute.xlu2 %101  ;;  %v1601_v49 = vsel %vm1035_vm0, %v1022_v41, -inf  ;;  %v1604_v56 = vsel %vm1035_vm0, %v1079_v4, -inf }
  0x8a   :  { %v170_v34 = vpop.permute.xlu0 %169  ;;  %v267_v38 = vsub.f32 %v251_v7, %v174_v33  ;;  %v331_v30 = vsub.f32 %v315_v0, %v174_v33  ;;  %v379_v25 = vadd.f32 %v363_v11, %v174_v33  ;;  %v1595_v1 = vadd.f32 %v102_v31, %v1420_v17 }
  0x8b   :  { %v265_v61 = vsub.f32 %v249_v37, %v170_v34  ;;  %v329_v24 = vsub.f32 %v313_v47, %v170_v34  ;;  %v377_v22 = vadd.f32 %v361_v3, %v170_v34  ;;  %v1598_v6 = vsub.f32 %v1420_v17, %v102_v31 }
  0x8c   :  { %v283_v29 = vmul.f32 0.5, %v267_v38  ;;  %v347_v35 = vmul.f32 0.5, %v331_v30  ;;  %v395_v36 = vmul.f32 0.5, %v379_v25  ;;  %v1607_v38 = vsel %vm1035_vm0, %v1135_v51, -inf }
  0x8d   :  { %v281_v54 = vmul.f32 0.5, %v265_v61  ;;  %v345_v58 = vmul.f32 0.5, %v329_v24  ;;  %v393_v47 = vmul.f32 0.5, %v377_v22  ;;  %v1611_v17 = vadd.f32 %v1595_v1, %v1466_v28 }
  0x8e   :  { %v1021_v37 = vand.u32 2147483647, %v283_v29  ;;  %v1078_v3 = vand.u32 2147483647, %v347_v35  ;;  %v1134_v7 = vand.u32 2147483647, %v395_v36  ;;  %v1620_v29 = vadd.f32 %v1598_v6, %v1466_v28 }
  0x8f   :  { %v1019_v24 = vand.u32 2147483647, %v281_v54  ;;  %v1076_v22 = vand.u32 2147483647, %v345_v58  ;;  %v1132_v31 = vand.u32 2147483647, %v393_v47  ;;  %v219_v51 = vadd.f32 %v174_v33, %v139_v63 }
  0x90   :  { %v1614_v25 = vsel %vm1035_vm0, %v1021_v37, -inf  ;;  %v1625_v0 = vsel %vm1035_vm0, %v1078_v3, -inf  ;;  %v1628_v54 = vsel %vm1035_vm0, %v1134_v7, -inf  ;;  %v217_v11 = vadd.f32 %v170_v34, %v137_v52 }
  0x91   :  { %v178_v4 = vpop.permute.xlu1 %177  ;;  %v2509_v35 = vsub.f32 %v1524_v55, %v1392_v9  ;;  %v186_v37 = vpop.permute.xlu2 %185  ;;  %v1633_v58 = vmul.f32 0.5, %v219_v51  ;;  %v2511_v63 = vsub.f32 %v1535_v59, %v1392_v9 }
  0x92   :  { %v90_v61 = vpop.permute.xlu0 %89  ;;  %v333_v47 = vsub.f32 %v1559_v44, %v178_v4  ;;  %v1640_v41 = vmul.f32 0.5, %v217_v11  ;;  %v221_v34 = vadd.f32 %v178_v4, %v1549_v8 }
  0x93   :  { %v269_v36 = vsub.f32 %v2509_v35, %v178_v4  ;;  %2510 = vst [vmem:[#allocation16_spill] sm:$0xff] %v1633_v58  ;;  %v381_v33 = vadd.f32 %v2511_v63, %v178_v4  ;;  %v129_v3 = vadd.f32 %v90_v61, %v1394_v10  ;;  %v305_v52 = vsub.f32 %v1394_v10, %v90_v61 }
  0x94   :  { %419 = vrot.lane.b32.xlu0 %v1633_v58, %s1340_s0  ;;  %v349_v55 = vmul.f32 0.5, %v333_v47  ;;  %417 = vrot.lane.b32.xlu2 %v1640_v41, %s1340_s0  ;;  %v1652_v61 = vmul.f32 0.5, %v221_v34  ;;  %v1655_v47 = vsel %vm1035_vm0, %v1019_v24, -inf  ;;  %v1092_v63 = vsel %vm1035_vm0, %v1076_v22, -inf }
  0x95   :  { %v285_v7 = vmul.f32 0.5, %v269_v36  ;;  %v397_v51 = vmul.f32 0.5, %v381_v33  ;;  %v145_v44 = vadd.f32 %v129_v3, %v1432_v20  ;;  %v257_v9 = vsub.f32 %v129_v3, %v1432_v20 }
  0x96   :  { %v321_v11 = vadd.f32 %v305_v52, %v1432_v20  ;;  %v369_v10 = vsub.f32 %v305_v52, %v1432_v20  ;;  %2512 = vst [vmem:[#allocation17_spill] sm:$0xff] %v1652_v61  ;;  %v1080_v8 = vand.u32 2147483647, %v349_v55  ;;  %421 = vrot.lane.b32.xlu1 %v1652_v61, %s1340_s0 }
  0x97   :  { %v1023_v59 = vand.u32 2147483647, %v285_v7  ;;  %v1136_v4 = vand.u32 2147483647, %v397_v51  ;;  %v273_v35 = vsub.f32 %v257_v9, %v186_v37  ;;  %v225_v36 = vadd.f32 %v186_v37, %v145_v44 }
  0x98   :  { %v337_v33 = vsub.f32 %v321_v11, %v186_v37  ;;  %v385_v3 = vadd.f32 %v369_v10, %v186_v37  ;;  %v1661_v7 = vsel %vm1035_vm0, %v1132_v31, -inf  ;;  %v1096_v52 = vsel %vm1035_vm0, %v1080_v8, -inf }
  0x99   :  { %v1664_v20 = vsel %vm1035_vm0, %v1023_v59, -inf  ;;  %v1668_v34 = vsel %vm1035_vm0, %v1136_v4, -inf  ;;  %v172_v24 = vpop.permute.xlu1 %171  ;;  %v1670_v51 = vmul.f32 0.5, %v273_v35  ;;  %v2513_v44 = vsub.f32 %v1553_v14, %v1404_v12  ;;  %v190_v9 = vpop.permute.xlu2 %189 }
  0x9a   :  { %v94_v55 = vpop.permute.xlu0 %93  ;;  %v353_v22 = vmul.f32 0.5, %v337_v33  ;;  %v218_v37 = vadd.f32 %v172_v24, %v1578_v43  ;;  %v330_v59 = vsub.f32 %v1584_v60, %v172_v24  ;;  %v2514_v11 = vsub.f32 %v1562_v50, %v1404_v12 }
  0x9b   :  { %v266_v31 = vsub.f32 %v2513_v44, %v172_v24  ;;  %v131_v8 = vadd.f32 %v94_v55, %v1406_v13  ;;  %v1681_v4 = vmul.f32 0.5, %v225_v36  ;;  %v1683_v35 = vmul.f32 0.5, %v385_v3 }
  0x9c   :  { %v378_v10 = vadd.f32 %v2514_v11, %v172_v24  ;;  %v1084_v33 = vand.u32 2147483647, %v353_v22  ;;  %v1685_v30 = vmul.f32 0.5, %v218_v37  ;;  %v346_v61 = vmul.f32 0.5, %v330_v59 }
  0x9d   :  { %v282_v43 = vmul.f32 0.5, %v266_v31  ;;  %v147_v44 = vadd.f32 %v131_v8, %v1444_v23  ;;  %v259_v60 = vsub.f32 %v131_v8, %v1444_v23  ;;  %v307_v12 = vsub.f32 %v1406_v13, %v94_v55 }
  0x9e   :  { %v394_v14 = vmul.f32 0.5, %v378_v10  ;;  %465 = vrot.lane.b32.xlu0 %v1685_v30, %s1340_s0  ;;  %v1097_v50 = vmax.f32 %v1092_v63, %v1096_v52  ;;  %v1104_v36 = vsel %vm1035_vm0, %v1084_v33, -inf  ;;  %v1077_v24 = vand.u32 2147483647, %v346_v61  ;;  %467 = vrot.lane.b32.xlu1 %v1592_v32, %s1340_s0 }
  0x9f   :  { %v1020_v58 = vand.u32 2147483647, %v282_v43  ;;  %v275_v37 = vsub.f32 %v259_v60, %v190_v9  ;;  %v323_v59 = vadd.f32 %v307_v12, %v1444_v23  ;;  %v371_v11 = vsub.f32 %v307_v12, %v1444_v23 }
  0xa0   :  { %v1133_v22 = vand.u32 2147483647, %v394_v14  ;;  %v1699_v13 = vmax.f32 %v1097_v50, %v1104_v36  ;;  %v1705_v52 = vsel %vm1035_vm0, %v1077_v24, -inf  ;;  %v227_v8 = vadd.f32 %v190_v9, %v147_v44 }
  0xa1   :  { %v1702_v63 = vsel %vm1035_vm0, %v1020_v58, -inf  ;;  %v1707_v61 = vmul.f32 0.5, %v275_v37  ;;  %v98_v55 = vpop.permute.xlu1 %97  ;;  %v339_v33 = vsub.f32 %v323_v59, %v190_v9  ;;  %v387_v43 = vadd.f32 %v371_v11, %v190_v9  ;;  %v194_v44 = vpop.permute.xlu2 %193 }
  0xa2   :  { %v182_v10 = vpop.permute.xlu0 %181  ;;  %v133_v23 = vadd.f32 %v98_v55, %v1416_v15  ;;  %v309_v14 = vsub.f32 %v1416_v15, %v98_v55  ;;  %v1712_v60 = vsel %vm1035_vm0, %v1133_v22, -inf  ;;  %v2515_v58 = vsub.f32 %v1490_v39, %v1418_v16 }
  0xa3   :  { %v335_v50 = vsub.f32 %v1499_v42, %v182_v10  ;;  %v2516_v36 = vsub.f32 %v1493_v40, %v1418_v16  ;;  %v355_v37 = vmul.f32 0.5, %v339_v33  ;;  %v1721_v9 = vmul.f32 0.5, %v387_v43 }
  0xa4   :  { %v271_v12 = vsub.f32 %v2515_v58, %v182_v10  ;;  %v149_v59 = vadd.f32 %v133_v23, %v1456_v26  ;;  %v261_v15 = vsub.f32 %v133_v23, %v1456_v26  ;;  %v325_v22 = vadd.f32 %v309_v14, %v1456_v26 }
  0xa5   :  { %v383_v24 = vadd.f32 %v2516_v36, %v182_v10  ;;  %v373_v11 = vsub.f32 %v309_v14, %v1456_v26  ;;  %v351_v55 = vmul.f32 0.5, %v335_v50  ;;  %v1728_v16 = vmul.f32 0.5, %v227_v8 }
  0xa6   :  { %v287_v39 = vmul.f32 0.5, %v271_v12  ;;  %v277_v31 = vsub.f32 %v261_v15, %v194_v44  ;;  %v341_v43 = vsub.f32 %v325_v22, %v194_v44  ;;  %v1086_v3 = vand.u32 2147483647, %v355_v37 }
  0xa7   :  { %v399_v58 = vmul.f32 0.5, %v383_v24  ;;  %v1082_v33 = vand.u32 2147483647, %v351_v55  ;;  %v389_v36 = vadd.f32 %v373_v11, %v194_v44  ;;  %427 = vrot.lane.b32.xlu1 %v1728_v16, %s1340_s0  ;;  %v223_v26 = vadd.f32 %v182_v10, %v1541_v2 }
  0xa8   :  { %v1025_v40 = vand.u32 2147483647, %v287_v39  ;;  %v1737_v12 = vmul.f32 0.5, %v277_v31  ;;  %v357_v8 = vmul.f32 0.5, %v341_v43  ;;  %v229_v15 = vadd.f32 %v194_v44, %v149_v59 }
  0xa9   :  { %v1138_v23 = vand.u32 2147483647, %v399_v58  ;;  %v180_v50 = vpop.permute.xlu1 %179  ;;  %v1100_v22 = vsel %vm1035_vm0, %v1082_v33, -inf  ;;  %v1740_v37 = vmul.f32 0.5, %v389_v36  ;;  %v1742_v11 = vmul.f32 0.5, %v223_v26 }
  0xaa   :  { %v1735_v14 = vsel %vm1035_vm0, %v1025_v40, -inf  ;;  %v92_v24 = vpop.permute.xlu0 %91  ;;  %v222_v39 = vadd.f32 %v180_v50, %v1545_v5  ;;  %v1088_v2 = vand.u32 2147483647, %v357_v8  ;;  %v2517_v31 = vsub.f32 %v1504_v45, %v1428_v18 }
  0xab   :  { %v1746_v55 = vsel %vm1035_vm0, %v1138_v23, -inf  ;;  %v334_v58 = vsub.f32 %v1513_v48, %v180_v50  ;;  %423 = vrot.lane.b32.xlu2 %v1742_v11, %s1340_s0  ;;  %v2518_v59 = vsub.f32 %v1507_v46, %v1428_v18  ;;  %v1760_v5 = vadd.f32 %v92_v24, %v1430_v19 }
  0xac   :  { %v270_v10 = vsub.f32 %v2517_v31, %v180_v50  ;;  %v1754_v44 = vmul.f32 0.5, %v222_v39  ;;  %v1763_v33 = vsub.f32 %v1430_v19, %v92_v24  ;;  %v1101_v48 = vmax.f32 %v1625_v0, %v1100_v22 }
  0xad   :  { %v382_v40 = vadd.f32 %v2518_v59, %v180_v50  ;;  %v350_v36 = vmul.f32 0.5, %v334_v58  ;;  %v1770_v8 = vadd.f32 %v1760_v5, %v1464_v27  ;;  %v1774_v18 = vmul.f32 0.5, %v229_v15 }
  0xae   :  { %v286_v43 = vmul.f32 0.5, %v270_v10  ;;  %469 = vrot.lane.b32.xlu0 %v1754_v44, %s1340_s0  ;;  %v1108_v24 = vsel %vm1035_vm0, %v1086_v3, -inf  ;;  %v1781_v0 = vadd.f32 %v1763_v33, %v1464_v27  ;;  %v1786_v39 = vsel %vm1035_vm0, %v1088_v2, -inf }
  0xaf   :  { %v398_v26 = vmul.f32 0.5, %v382_v40  ;;  %2519 = vst [vmem:[#allocation18_spill] sm:$0xff] %v1774_v18  ;;  %v1081_v46 = vand.u32 2147483647, %v350_v36  ;;  %v1783_v22 = vmax.f32 %v1101_v48, %v1108_v24  ;;  %v1041_v15 = vmax.f32 %v1655_v47, %v1664_v20  ;;  %v2521_v48 = vld [vmem:[#allocation14_spill] sm:$0xff]  ;;  %v2523_v24 = vld [vmem:[#allocation8_spill] sm:$0xff] }
  0xb0   :  { %v1024_v19 = vand.u32 2147483647, %v286_v43  ;;  %v1045_v40 = vmax.f32 %v1614_v25, %v1735_v14  ;;  %v2520_v47 = vsub.f32 %v1518_v53, %v1440_v21 }
  0xb1   :  { %v1794_v10 = vsel %vm1035_vm0, %v1081_v46, -inf  ;;  %v184_v58 = vpop.permute.xlu1 %183  ;;  %v1137_v14 = vand.u32 2147483647, %v398_v26 }
  0xb2   :  { %v1791_v31 = vsel %vm1035_vm0, %v1024_v19, -inf  ;;  %v96_v3 = vpop.permute.xlu0 %95  ;;  %v224_v43 = vadd.f32 %v184_v58, %v1574_v62  ;;  %v272_v20 = vsub.f32 %v2520_v47, %v184_v58  ;;  %v336_v36 = vsub.f32 %v1530_v57, %v184_v58  ;;  %v192_v47 = vpop.permute.xlu2 %191 }
  0xb3   :  { %v2522_v19 = vsub.f32 %v2521_v48, %v1440_v21  ;;  %v132_v59 = vadd.f32 %v96_v3, %v2523_v24  ;;  %v308_v23 = vsub.f32 %v2523_v24, %v96_v3  ;;  %425 = vrot.lane.b32.xlu2 %v1681_v4, %s1340_s0  ;;  %v2524_v21 = vld [vmem:[#allocation11_spill] sm:$0xff] }
  0xb4   :  { %v288_v62 = vmul.f32 0.5, %v272_v20  ;;  %v352_v53 = vmul.f32 0.5, %v336_v36  ;;  %v2525_v20 = vand.u32 2147483647, %v1670_v51  ;;  %v1827_v25 = vmul.f32 0.5, %v224_v43 }
  0xb5   :  { %v384_v46 = vadd.f32 %v2522_v19, %v184_v58  ;;  %v148_v58 = vadd.f32 %v132_v59, %v2524_v21  ;;  %v260_v48 = vsub.f32 %v132_v59, %v2524_v21  ;;  %v324_v3 = vadd.f32 %v308_v23, %v2524_v21 }
  0xb6   :  { %v1026_v19 = vand.u32 2147483647, %v288_v62  ;;  %v1083_v24 = vand.u32 2147483647, %v352_v53  ;;  %v372_v26 = vsub.f32 %v308_v23, %v2524_v21  ;;  %429 = vrot.lane.b32.xlu0 %v1774_v18, %s1340_s0  ;;  %v1048_v36 = vsel %vm1035_vm0, %v2525_v20, -inf }
  0xb7   :  { %v400_v32 = vmul.f32 0.5, %v384_v46  ;;  %v276_v57 = vsub.f32 %v260_v48, %v192_v47  ;;  %v340_v2 = vsub.f32 %v324_v3, %v192_v47  ;;  %v228_v50 = vadd.f32 %v192_v47, %v148_v58 }
  0xb8   :  { %v1102_v59 = vsel %vm1035_vm0, %v1083_v24, -inf  ;;  %v388_v45 = vadd.f32 %v372_v26, %v192_v47  ;;  %v1830_v62 = vmax.f32 %v1041_v15, %v1048_v36  ;;  %v1833_v23 = vsel %vm1035_vm0, %v1137_v14, -inf  ;;  %v2527_v47 = vld [vmem:[#allocation10_spill] sm:$0xff]  ;;  %v2528_v24 = vld [vmem:[#allocation12_spill] sm:$0xff] }
  0xb9   :  { %v1139_v46 = vand.u32 2147483647, %v400_v32  ;;  %v1046_v53 = vsel %vm1035_vm0, %v1026_v19, -inf  ;;  %v292_v21 = vmul.f32 0.5, %v276_v57  ;;  %v356_v51 = vmul.f32 0.5, %v340_v2  ;;  %v104_v42 = vpop.permute.xlu1 %103  ;;  %v2526_v32 = vld [vmem:[#allocation9_spill] sm:$0xff] }
  0xba   :  { %v100_v20 = vpop.permute.xlu0 %99  ;;  %v1836_v43 = vmul.f32 0.5, %v388_v45  ;;  %v1839_v48 = vadd.f32 %v104_v42, %v2526_v32  ;;  %v1842_v3 = vsub.f32 %v2526_v32, %v104_v42  ;;  %v1103_v2 = vmax.f32 %v1604_v56, %v1102_v59 }
  0xbb   :  { %v1845_v15 = vadd.f32 %v100_v20, %v2527_v47  ;;  %v1848_v14 = vsel %vm1035_vm0, %v1139_v46, -inf  ;;  %v1030_v58 = vand.u32 2147483647, %v292_v21  ;;  %v1087_v19 = vand.u32 2147483647, %v356_v51  ;;  %471 = vrot.lane.b32.xlu2 %v1827_v25, %s1340_s0 }
  0xbc   :  { %v1851_v57 = vmul.f32 0.5, %v228_v50  ;;  %v1143_v45 = vand.u32 2147483647, %v1836_v43  ;;  %v152_v42 = vadd.f32 %v1839_v48, %v2528_v24  ;;  %v1859_v26 = vsub.f32 %v2527_v47, %v100_v20  ;;  %v2529_v50 = vld [vmem:[#allocation13_spill] sm:$0xff] }
  0xbd   :  { %v264_v36 = vsub.f32 %v1839_v48, %v2528_v24  ;;  %v1865_v46 = vadd.f32 %v1842_v3, %v2528_v24  ;;  %v376_v56 = vsub.f32 %v1842_v3, %v2528_v24  ;;  %v150_v59 = vadd.f32 %v1845_v15, %v2529_v50 }
  0xbe   :  { %v262_v21 = vsub.f32 %v1845_v15, %v2529_v50  ;;  %475 = vrot.lane.b32.xlu0 %v1851_v57, %s1340_s0  ;;  %v1110_v51 = vsel %vm1035_vm0, %v1087_v19, -inf  ;;  %v1047_v20 = vmax.f32 %v1601_v49, %v1046_v53  ;;  %v2530_v43 = vand.u32 2147483647, %v1707_v61 }
  0xbf   :  { %v1880_v48 = vmax.f32 %v1103_v2, %v1110_v51  ;;  %v1054_v47 = vsel %vm1035_vm0, %v1030_v58, -inf  ;;  %v2531_v24 = vand.u32 2147483647, %v1737_v12  ;;  %v1153_v61 = vmax.f32 %v1661_v7, %v1668_v34 }
  0xc0   :  { %v1052_v32 = vsel %vm1035_vm0, %v2530_v43, -inf  ;;  %v1890_v18 = vmax.f32 %v1047_v20, %v1054_v47  ;;  %v1157_v12 = vmax.f32 %v1628_v54, %v1746_v55  ;;  %v2532_v51 = vand.u32 2147483647, %v1683_v35 }
  0xc1   :  { %v1882_v3 = vmax.f32 %v1045_v40, %v1052_v32  ;;  %v1888_v15 = vsel %vm1035_vm0, %v2531_v24, -inf  ;;  %v326_v40 = vadd.f32 %v1859_v26, %v2529_v50  ;;  %v188_v58 = vpop.permute.xlu1 %187  ;;  %v2533_v34 = vsub.f32 %v1760_v5, %v1464_v27 }
  0xc2   :  { %v198_v19 = vpop.permute.xlu0 %197  ;;  %v1160_v20 = vsel %vm1035_vm0, %v2532_v51, -inf  ;;  %v226_v7 = vadd.f32 %v188_v58, %v1770_v8  ;;  %v338_v32 = vsub.f32 %v1781_v0, %v188_v58  ;;  %v2534_v47 = vsub.f32 %v1763_v33, %v1464_v27 }
  0xc3   :  { %v274_v43 = vsub.f32 %v2533_v34, %v188_v58  ;;  %v2535_v54 = vsub.f32 %v1595_v1, %v1466_v28  ;;  %v343_v35 = vsub.f32 %v1620_v29, %v198_v19  ;;  %v2536_v51 = vsub.f32 %v1598_v6, %v1466_v28 }
  0xc4   :  { %v386_v24 = vadd.f32 %v2534_v47, %v188_v58  ;;  %v231_v49 = vadd.f32 %v198_v19, %v1611_v17  ;;  %v1923_v5 = vmul.f32 0.5, %v226_v7  ;;  %v354_v0 = vmul.f32 0.5, %v338_v32 }
  0xc5   :  { %v279_v55 = vsub.f32 %v2535_v54, %v198_v19  ;;  %v391_v8 = vadd.f32 %v2536_v51, %v198_v19  ;;  %v290_v34 = vmul.f32 0.5, %v274_v43  ;;  %v359_v27 = vmul.f32 0.5, %v343_v35 }
  0xc6   :  { %v402_v53 = vmul.f32 0.5, %v386_v24  ;;  %v1925_v58 = vmul.f32 0.5, %v231_v49  ;;  %v1085_v47 = vand.u32 2147483647, %v354_v0  ;;  %473 = vrot.lane.b32.xlu2 %v1923_v5, %s1340_s0  ;;  %v1929_v29 = vmax.f32 %v1153_v61, %v1160_v20 }
  0xc7   :  { %v295_v2 = vmul.f32 0.5, %v279_v55  ;;  %v407_v33 = vmul.f32 0.5, %v391_v8  ;;  %v1028_v1 = vand.u32 2147483647, %v290_v34  ;;  %v2537_v28 = vand.u32 2147483647, %v1721_v9 }
  0xc8   :  { %v374_v17 = vsub.f32 %v1859_v26, %v2529_v50  ;;  %v1141_v19 = vand.u32 2147483647, %v402_v53  ;;  %v1090_v7 = vand.u32 2147483647, %v359_v27  ;;  %431 = vrot.lane.b32.xlu1 %v1925_v58, %s1340_s0  ;;  %v1106_v24 = vsel %vm1035_vm0, %v1085_v47, -inf }
  0xc9   :  { %v1164_v6 = vsel %vm1035_vm0, %v2537_v28, -inf  ;;  %v1033_v43 = vand.u32 2147483647, %v295_v2  ;;  %v1146_v32 = vand.u32 2147483647, %v407_v33  ;;  %v1050_v61 = vsel %vm1035_vm0, %v1028_v1, -inf  ;;  %v200_v20 = vpop.permute.xlu1 %199 }
  0xca   :  { %v1938_v49 = vmax.f32 %v1157_v12, %v1164_v6  ;;  %v196_v9 = vpop.permute.xlu0 %195  ;;  %v2538_v54 = vmax.f32 %v1705_v52, %v1794_v10  ;;  %v1116_v26 = vsel %vm1035_vm0, %v1090_v7, -inf  ;;  %v2539_v50 = vmax.f32 %v1702_v63, %v1791_v31 }
  0xcb   :  { %v1166_v12 = vsel %vm1035_vm0, %v1143_v45, -inf  ;;  %v232_v2 = vadd.f32 %v200_v20, %v152_v42  ;;  %v280_v35 = vsub.f32 %v264_v36, %v200_v20  ;;  %v344_v51 = vsub.f32 %v1865_v46, %v200_v20 }
  0xcc   :  { %v1107_v55 = vmax.f32 %v2538_v54, %v1106_v24  ;;  %v1051_v53 = vmax.f32 %v2539_v50, %v1050_v61  ;;  %v392_v8 = vadd.f32 %v376_v56, %v200_v20  ;;  %v230_v34 = vadd.f32 %v196_v9, %v150_v59 }
  0xcd   :  { %v278_v0 = vsub.f32 %v262_v21, %v196_v9  ;;  %v342_v27 = vsub.f32 %v326_v40, %v196_v9  ;;  %v390_v33 = vadd.f32 %v374_v17, %v196_v9  ;;  %v1951_v1 = vmul.f32 0.5, %v232_v2 }
  0xce   :  { %v296_v52 = vmul.f32 0.5, %v280_v35  ;;  %v360_v10 = vmul.f32 0.5, %v344_v51  ;;  %v1060_v47 = vsel %vm1035_vm0, %v1033_v43, -inf  ;;  %v1954_v28 = vmul.f32 0.5, %v230_v34 }
  0xcf   :  { %v294_v63 = vmul.f32 0.5, %v278_v0  ;;  %v358_v31 = vmul.f32 0.5, %v342_v27  ;;  %v2540_v45 = vand.u32 2147483647, %v1740_v37  ;;  %v408_v36 = vmul.f32 0.5, %v392_v8  ;;  %479 = vrot.lane.b32.xlu2 %v1951_v1, %s1340_s0 }
  0xd0   :  { %v1034_v46 = vand.u32 2147483647, %v296_v52  ;;  %v1091_v56 = vand.u32 2147483647, %v360_v10  ;;  %v1117_v59 = vmax.f32 %v1783_v22, %v1116_v26  ;;  %v406_v21 = vmul.f32 0.5, %v390_v33  ;;  %477 = vrot.lane.b32.xlu1 %v1954_v28, %s1340_s0 }
  0xd1   :  { %v1168_v42 = vsel %vm1035_vm0, %v2540_v45, -inf  ;;  %v1032_v40 = vand.u32 2147483647, %v294_v63  ;;  %v1089_v6 = vand.u32 2147483647, %v358_v31  ;;  %v1061_v17 = vmax.f32 %v1882_v3, %v1060_v47  ;;  %v2545_v47 = vld [vmem:[#allocation16_spill] sm:$0xff] }
  0xd2   :  { %v1118_v37 = vsel %vm1035_vm0, %v1091_v56, -inf  ;;  %v1062_v7 = vsel %vm1035_vm0, %v1034_v46, -inf  ;;  %v2541_v43 = vmax.f32 %v1607_v38, %v1848_v14  ;;  %v1169_v61 = vmax.f32 %v1929_v29, %v1168_v42 }
  0xd3   :  { %v1114_v22 = vsel %vm1035_vm0, %v1089_v6, -inf  ;;  %v1119_v20 = vmax.f32 %v1880_v48, %v1118_v37  ;;  %v1058_v9 = vsel %vm1035_vm0, %v1032_v40, -inf  ;;  %v1063_v54 = vmax.f32 %v1890_v18, %v1062_v7  ;;  %v2546_v6 = vld [vmem:[#allocation15_spill] sm:$0xff] }
  0xd4   :  { %v1167_v24 = vmax.f32 %v2541_v43, %v1166_v12  ;;  %v1115_v26 = vmax.f32 %v1107_v55, %v1114_v22  ;;  %v1059_v3 = vmax.f32 %v1051_v53, %v1058_v9  ;;  %v1162_v50 = vsel %vm1035_vm0, %v1141_v19, -inf }
  0xd5   :  { %v1172_v2 = vsel %vm1035_vm0, %v1146_v32, -inf  ;;  %v1977_v35 = vmax.f32 %v1117_v59, %v1119_v20  ;;  %v1979_v38 = vmax.f32 %v1061_v17, %v1063_v54  ;;  %v2542_v14 = vmax.f32 %v1712_v60, %v1833_v23 }
  0xd6   :  { %v1173_v48 = vmax.f32 %v1938_v49, %v1172_v2  ;;  %v2543_v12 = vmax.f32 %v1699_v13, %v1786_v39  ;;  %v2544_v19 = vmax.f32 %v1830_v62, %v1888_v15  ;;  %v1147_v32 = vand.u32 2147483647, %v408_v36 }
  0xd7   :  { %v1163_v29 = vmax.f32 %v2542_v14, %v1162_v50  ;;  %v1145_v53 = vand.u32 2147483647, %v406_v21 }
  0xd8   :  { %v1988_v18 = vmax.f32 %v2543_v12, %v1115_v26  ;;  %v1993_v55 = vmax.f32 %v2544_v19, %v1059_v3  ;;  %v1174_v49 = vsel %vm1035_vm0, %v1147_v32, -inf }
  0xd9   :  { %v1170_v23 = vsel %vm1035_vm0, %v1145_v53, -inf  ;;  %v1175_v39 = vmax.f32 %v1167_v24, %v1174_v49  ;;  %v2547_v49 = vld [vmem:[#allocation17_spill] sm:$0xff] }
  0xda   :  { %v1171_v13 = vmax.f32 %v1163_v29, %v1170_v23 }
  0xdb   :  { %v2003_v34 = vmax.f32 %v1173_v48, %v1175_v39 }
  0xdc   :  { %v2001_v8 = vmax.f32 %v1169_v61, %v1171_v13 }
  0xee   :  { %v418_v15 = vpop.permute.xlu2 %417 }
  0xef   :  { %v441_v52 = vadd.f32 %v418_v15, %v1640_v41  ;;  %v529_v10 = vsub.f32 %v1640_v41, %v418_v15 }
  0xf1   :  { %v449_v42 = vadd.f32 %v441_v52, %v1685_v30  ;;  %v505_v36 = vsub.f32 %v441_v52, %v1685_v30  ;;  %v537_v46 = vadd.f32 %v529_v10, %v1685_v30  ;;  %v561_v56 = vsub.f32 %v529_v10, %v1685_v30 }
 0x105   :  { %v424_v0 = vpop.permute.xlu2 %423 }
 0x106   :  { %v420_v27 = vpop.permute.xlu0 %419  ;;  %v444_v59 = vadd.f32 %v424_v0, %v1742_v11  ;;  %v532_v21 = vsub.f32 %v1742_v11, %v424_v0 }
 0x107   :  { %v442_v63 = vadd.f32 %v420_v27, %v2545_v47  ;;  %v530_v31 = vsub.f32 %v2545_v47, %v420_v27 }
 0x108   :  { %v422_v33 = vpop.permute.xlu1 %421  ;;  %v452_v3 = vadd.f32 %v444_v59, %v1827_v25  ;;  %v508_v50 = vsub.f32 %v444_v59, %v1827_v25  ;;  %v2039_v14 = vadd.f32 %v532_v21, %v1827_v25  ;;  %v564_v29 = vsub.f32 %v532_v21, %v1827_v25 }
 0x109   :  { %v450_v41 = vadd.f32 %v442_v63, %v2546_v6  ;;  %v506_v17 = vsub.f32 %v442_v63, %v2546_v6  ;;  %v2020_v37 = vadd.f32 %v530_v31, %v2546_v6  ;;  %v562_v7 = vsub.f32 %v530_v31, %v2546_v6 }
 0x10a   :  { %v443_v13 = vadd.f32 %v422_v33, %v2547_v49  ;;  %v531_v52 = vsub.f32 %v2547_v49, %v422_v33 }
 0x10c   :  { %v2079_v6 = vadd.f32 %v531_v52, %v1754_v44 }
 0x10d   :  { %v426_v45 = vpop.permute.xlu2 %425 }
 0x10e   :  { %v445_v39 = vadd.f32 %v426_v45, %v1681_v4  ;;  %v533_v10 = vsub.f32 %v1681_v4, %v426_v45 }
 0x110   :  { %v466_v40 = vpop.permute.xlu0 %465  ;;  %v2023_v43 = vpop.permute.xlu1 %467  ;;  %v509_v33 = vsub.f32 %v445_v39, %v1923_v5  ;;  %v541_v45 = vadd.f32 %v533_v10, %v1923_v5  ;;  %v565_v21 = vsub.f32 %v533_v10, %v1923_v5 }
 0x111   :  { %v489_v24 = vadd.f32 %v466_v40, %v449_v42  ;;  %v513_v61 = vsub.f32 %v505_v36, %v466_v40  ;;  %v545_v22 = vsub.f32 %v537_v46, %v466_v40  ;;  %v569_v30 = vadd.f32 %v561_v56, %v466_v40 }
 0x112   :  { %v490_v20 = vadd.f32 %v2023_v43, %v450_v41  ;;  %v2027_v11 = vsub.f32 %v506_v17, %v2023_v43  ;;  %v546_v9 = vsub.f32 %v2020_v37, %v2023_v43  ;;  %v570_v54 = vadd.f32 %v562_v7, %v2023_v43 }
 0x113   :  { %v2032_v26 = vmul.f32 0.5, %v489_v24  ;;  %v577_v19 = vmul.f32 0.5, %v569_v30  ;;  %v521_v31 = vmul.f32 0.5, %v513_v61  ;;  %v553_v42 = vmul.f32 0.5, %v545_v22 }
 0x114   :  { %v2036_v2 = vmul.f32 0.5, %v490_v20  ;;  %v578_v48 = vmul.f32 0.5, %v570_v54  ;;  %v451_v36 = vadd.f32 %v443_v13, %v1754_v44  ;;  %v507_v46 = vsub.f32 %v443_v13, %v1754_v44 }
 0x115   :  { %v2042_v12 = vpop.permute.xlu2 %471  ;;  %593 = vrot.lane.b32.xlu0 %v2032_v26, %s1341_s14  ;;  %v987_v27 = vand.u32 2147483647, %v577_v19  ;;  %v453_v56 = vadd.f32 %v445_v39, %v1923_v5  ;;  %v563_v41 = vsub.f32 %v531_v52, %v1754_v44  ;;  %v922_v17 = vand.u32 2147483647, %v521_v31 }
 0x116   :  { %595 = vrot.lane.b32.xlu1 %v2036_v2, %s1341_s14  ;;  %v492_v32 = vadd.f32 %v2042_v12, %v452_v3  ;;  %v2050_v53 = vsub.f32 %v508_v50, %v2042_v12  ;;  %v548_v23 = vsub.f32 %v2039_v14, %v2042_v12  ;;  %v572_v25 = vadd.f32 %v564_v29, %v2042_v12 }
 0x117   :  { %v988_v15 = vand.u32 2147483647, %v578_v48  ;;  %v2067_v59 = vsel %vm930_vm1, %v987_v27, -inf  ;;  %v955_v7 = vand.u32 2147483647, %v553_v42  ;;  %v931_v10 = vsel %vm930_vm1, %v922_v17, -inf }
 0x118   :  { %v580_v0 = vmul.f32 0.5, %v572_v25  ;;  %v2059_v47 = vmul.f32 0.5, %v492_v32  ;;  %v522_v17 = vmul.f32 0.5, %v2027_v11 }
 0x119   :  { %v2070_v4 = vsel %vm930_vm1, %v988_v15, -inf  ;;  %v963_v27 = vsel %vm930_vm1, %v955_v7, -inf  ;;  %v428_v31 = vpop.permute.xlu1 %427 }
 0x11a   :  { %v990_v63 = vand.u32 2147483647, %v580_v0  ;;  %v2111_v7 = vrot.slane %v2059_v47, 4 }
 0x11c   :  { %v2076_v40 = vsel %vm930_vm1, %v990_v63, -inf }
 0x11d   :  { %599 = vrot.lane.b32.xlu0 %v2059_v47, %s1341_s14 }
 0x120   :  { %v474_v24 = vpop.permute.xlu2 %473  ;;  %v2082_v61 = vpop.permute.xlu0 %469 }
 0x121   :  { %v493_v22 = vadd.f32 %v474_v24, %v453_v56  ;;  %v517_v30 = vsub.f32 %v509_v33, %v474_v24  ;;  %v549_v20 = vsub.f32 %v541_v45, %v474_v24  ;;  %v573_v54 = vadd.f32 %v565_v21, %v474_v24 }
 0x122   :  { %v491_v3 = vadd.f32 %v2082_v61, %v451_v36  ;;  %v2086_v5 = vsub.f32 %v507_v46, %v2082_v61  ;;  %v547_v50 = vsub.f32 %v2079_v6, %v2082_v61  ;;  %v571_v29 = vadd.f32 %v563_v41, %v2082_v61 }
 0x123   :  { %v2091_v44 = vmul.f32 0.5, %v493_v22  ;;  %v525_v48 = vmul.f32 0.5, %v517_v30  ;;  %v557_v19 = vmul.f32 0.5, %v549_v20  ;;  %v581_v32 = vmul.f32 0.5, %v573_v54 }
 0x124   :  { %v2093_v25 = vmul.f32 0.5, %v491_v3  ;;  %v579_v49 = vmul.f32 0.5, %v571_v29  ;;  %v446_v21 = vadd.f32 %v428_v31, %v1728_v16  ;;  %v534_v41 = vsub.f32 %v1728_v16, %v428_v31 }
 0x125   :  { %v926_v13 = vand.u32 2147483647, %v525_v48  ;;  %v959_v39 = vand.u32 2147483647, %v557_v19  ;;  %v991_v15 = vand.u32 2147483647, %v581_v32  ;;  %601 = vrot.lane.b32.xlu0 %v2091_v44, %s1341_s14 }
 0x126   :  { %v989_v0 = vand.u32 2147483647, %v579_v49  ;;  %597 = vrot.lane.b32.xlu2 %v2093_v25, %s1341_s14  ;;  %v554_v24 = vmul.f32 0.5, %v546_v9  ;;  %v454_v22 = vadd.f32 %v446_v21, %v1851_v57  ;;  %v542_v30 = vadd.f32 %v534_v41, %v1851_v57 }
 0x127   :  { %v967_v52 = vsel %vm930_vm1, %v959_v39, -inf  ;;  %v935_v63 = vsel %vm930_vm1, %v926_v13, -inf  ;;  %v999_v33 = vsel %vm930_vm1, %v991_v15, -inf  ;;  %v566_v16 = vsub.f32 %v534_v41, %v1851_v57 }
 0x128   :  { %v430_v42 = vpop.permute.xlu0 %429  ;;  %v968_v36 = vmax.f32 %v963_v27, %v967_v52  ;;  %v936_v46 = vmax.f32 %v931_v10, %v935_v63  ;;  %v2104_v56 = vsel %vm930_vm1, %v989_v0, -inf  ;;  %v1000_v45 = vmax.f32 %v2067_v59, %v999_v33 }
 0x129   :  { %v510_v59 = vsub.f32 %v446_v21, %v1851_v57  ;;  %v923_v48 = vand.u32 2147483647, %v522_v17  ;;  %v956_v19 = vand.u32 2147483647, %v554_v24  ;;  %v2126_v49 = vrot.slane %v2091_v44, 4 }
 0x12b   :  { %v964_v57 = vsel %vm930_vm1, %v956_v19, -inf  ;;  %v932_v27 = vsel %vm930_vm1, %v923_v48, -inf }
 0x12d   :  { %655 = vrot.lane.b32.xlu0 %v2111_v7, %s1341_s14 }
 0x130   :  { %v476_v20 = vpop.permute.xlu0 %475 }
 0x131   :  { %v494_v54 = vadd.f32 %v476_v20, %v454_v22  ;;  %v518_v3 = vsub.f32 %v510_v59, %v476_v20  ;;  %v550_v29 = vsub.f32 %v542_v30, %v476_v20  ;;  %v574_v11 = vadd.f32 %v566_v16, %v476_v20  ;;  %v2548_v30 = vld [vmem:[#allocation18_spill] sm:$0xff]  ;;  %v480_v20 = vpop.permute.xlu2 %479 }
 0x132   :  { %v524_v59 = vmul.f32 0.5, %v2050_v53  ;;  %v447_v16 = vadd.f32 %v430_v42, %v2548_v30  ;;  %v556_v53 = vmul.f32 0.5, %v548_v23 }
 0x133   :  { %v2123_v37 = vmul.f32 0.5, %v494_v54  ;;  %v526_v43 = vmul.f32 0.5, %v518_v3  ;;  %v558_v9 = vmul.f32 0.5, %v550_v29  ;;  %v582_v32 = vmul.f32 0.5, %v574_v11 }
 0x134   :  { %v2147_v54 = vrot.slane %v2036_v2, 4 }
 0x135   :  { %v927_v13 = vand.u32 2147483647, %v526_v43  ;;  %v960_v39 = vand.u32 2147483647, %v558_v9  ;;  %v992_v15 = vand.u32 2147483647, %v582_v32  ;;  %603 = vrot.lane.b32.xlu2 %v2123_v37, %s1341_s14  ;;  %657 = vrot.lane.b32.xlu0 %v2126_v49, %s1341_s14  ;;  %v455_v32 = vadd.f32 %v447_v16, %v1954_v28 }
 0x136   :  { %v925_v43 = vand.u32 2147483647, %v524_v59  ;;  %v523_v9 = vmul.f32 0.5, %v2086_v5 }
 0x137   :  { %v969_v0 = vsel %vm930_vm1, %v960_v39, -inf  ;;  %v937_v52 = vsel %vm930_vm1, %v927_v13, -inf  ;;  %v1001_v10 = vsel %vm930_vm1, %v992_v15, -inf  ;;  %v958_v13 = vand.u32 2147483647, %v556_v53 }
 0x138   :  { %v970_v63 = vmax.f32 %v964_v57, %v969_v0  ;;  %v938_v31 = vmax.f32 %v932_v27, %v937_v52  ;;  %v1002_v33 = vmax.f32 %v2070_v4, %v1001_v10  ;;  %v511_v39 = vsub.f32 %v447_v16, %v1954_v28 }
 0x139   :  { %v966_v53 = vsel %vm930_vm1, %v958_v13, -inf }
 0x13a   :  { %v432_v21 = vpop.permute.xlu1 %431  ;;  %v2140_v24 = vmax.f32 %v968_v36, %v970_v63  ;;  %v2142_v22 = vmax.f32 %v936_v46, %v938_v31  ;;  %v2149_v3 = vmax.f32 %v1000_v45, %v1002_v33  ;;  %v535_v46 = vsub.f32 %v2548_v30, %v430_v42 }
 0x13b   :  { %v448_v41 = vadd.f32 %v432_v21, %v1925_v58  ;;  %v536_v17 = vsub.f32 %v1925_v58, %v432_v21  ;;  %v924_v31 = vand.u32 2147483647, %v523_v9 }
 0x13c   :  { %v543_v15 = vadd.f32 %v535_v46, %v1954_v28  ;;  %v567_v57 = vsub.f32 %v535_v46, %v1954_v28 }
 0x13d   :  { %v456_v4 = vadd.f32 %v448_v41, %v1951_v1  ;;  %v512_v29 = vsub.f32 %v448_v41, %v1951_v1  ;;  %v544_v58 = vadd.f32 %v536_v17, %v1951_v1  ;;  %v568_v36 = vsub.f32 %v536_v17, %v1951_v1  ;;  %651 = vrot.lane.b32.xlu2 %v2147_v54, %s1341_s14 }
 0x13e   :  { %v555_v1 = vmul.f32 0.5, %v547_v50  ;;  %v933_v46 = vsel %vm930_vm1, %v924_v31, -inf }
 0x13f   :  { %v496_v11 = vadd.f32 %v480_v20, %v456_v4  ;;  %v520_v45 = vsub.f32 %v512_v29, %v480_v20  ;;  %v552_v48 = vsub.f32 %v544_v58, %v480_v20  ;;  %v576_v19 = vadd.f32 %v568_v36, %v480_v20 }
 0x140   :  { %v957_v33 = vand.u32 2147483647, %v555_v1 }
 0x141   :  { %v2166_v14 = vmul.f32 0.5, %v496_v11  ;;  %v528_v12 = vmul.f32 0.5, %v520_v45  ;;  %v560_v23 = vmul.f32 0.5, %v552_v48  ;;  %v584_v42 = vmul.f32 0.5, %v576_v19 }
 0x142   :  { %v478_v0 = vpop.permute.xlu1 %477  ;;  %v965_v36 = vsel %vm930_vm1, %v957_v33, -inf  ;;  %v934_v11 = vsel %vm930_vm1, %v925_v43, -inf }
 0x143   :  { %v929_v5 = vand.u32 2147483647, %v528_v12  ;;  %v962_v27 = vand.u32 2147483647, %v560_v23  ;;  %v994_v52 = vand.u32 2147483647, %v584_v42  ;;  %v495_v6 = vadd.f32 %v478_v0, %v455_v32 }
 0x144   :  { %v519_v61 = vsub.f32 %v511_v39, %v478_v0  ;;  %v551_v50 = vsub.f32 %v543_v15, %v478_v0  ;;  %v575_v10 = vadd.f32 %v567_v57, %v478_v0  ;;  %v2172_v63 = vrot.slane %v2166_v14, 4 }
 0x145   :  { %v2174_v21 = vmul.f32 0.5, %v495_v6  ;;  %v1005_v41 = vsel %vm930_vm1, %v994_v52, -inf  ;;  %607 = vrot.lane.b32.xlu2 %v2166_v14, %s1341_s14  ;;  %v973_v30 = vsel %vm930_vm1, %v962_v27, -inf  ;;  %v941_v16 = vsel %vm930_vm1, %v929_v5, -inf }
 0x146   :  { %v527_v17 = vmul.f32 0.5, %v519_v61  ;;  %v559_v59 = vmul.f32 0.5, %v551_v50  ;;  %v583_v28 = vmul.f32 0.5, %v575_v10  ;;  %663 = vrot.lane.b32.xlu0 %v2172_v63, %s1341_s14  ;;  %v1006_v20 = vmax.f32 %v2076_v40, %v1005_v41 }
 0x147   :  { %605 = vrot.lane.b32.xlu1 %v2174_v21, %s1341_s14  ;;  %v974_v48 = vmax.f32 %v966_v53, %v973_v30  ;;  %v942_v32 = vmax.f32 %v934_v11, %v941_v16  ;;  %v2195_v23 = vrot.slane %v2174_v21, 4  ;;  %v2198_v42 = vrot.slane %v2032_v26, 4 }
 0x148   :  { %v928_v4 = vand.u32 2147483647, %v527_v17  ;;  %v961_v29 = vand.u32 2147483647, %v559_v59  ;;  %v993_v58 = vand.u32 2147483647, %v583_v28 }
 0x149   :  { %v2211_v0 = vrot.slane %v2093_v25, 4  ;;  %v2216_v5 = vrot.slane %v2123_v37, 4 }
 0x14a   :  { %v971_v45 = vsel %vm930_vm1, %v961_v29, -inf  ;;  %v939_v19 = vsel %vm930_vm1, %v928_v4, -inf  ;;  %v1003_v9 = vsel %vm930_vm1, %v993_v58, -inf }
 0x14b   :  { %v972_v1 = vmax.f32 %v965_v36, %v971_v45  ;;  %v940_v40 = vmax.f32 %v933_v46, %v939_v19  ;;  %v1004_v12 = vmax.f32 %v2104_v56, %v1003_v9 }
 0x14d   :  { %v976_v13 = vmax.f32 %v972_v1, %v974_v48  ;;  %v944_v43 = vmax.f32 %v940_v40, %v942_v32  ;;  %v2200_v39 = vmax.f32 %v1004_v12, %v1006_v20  ;;  %661 = vrot.lane.b32.xlu2 %v2195_v23, %s1341_s14 }
 0x14f   :  { %649 = vrot.lane.b32.xlu1 %v2198_v42, %s1341_s14  ;;  %v977_v15 = vmax.f32 %v2140_v24, %v976_v13  ;;  %v945_v56 = vmax.f32 %v2142_v22, %v944_v43 }
 0x157   :  { %653 = vrot.lane.b32.xlu1 %v2211_v0, %s1341_s14 }
 0x15f   :  { %659 = vrot.lane.b32.xlu1 %v2216_v5, %s1341_s14 }
 0x170   :  { %978 = vmax.xlane.f32.xlu0 %v977_v15 }
 0x176   :  { %946 = vmax.xlane.f32.xlu2 %v945_v56 }
 0x180   :  { %v598_v22 = vpop.permute.xlu2 %597 }
 0x181   :  { %v2225_v41 = vadd.f32 %v598_v22, %v2093_v25  ;;  %v2231_v30 = vsub.f32 %v2093_v25, %v598_v22 }
 0x183   :  { %v2239_v58 = vadd.f32 %v2211_v0, %v2225_v41  ;;  %v691_v25 = vsub.f32 %v2225_v41, %v2211_v0  ;;  %v2255_v45 = vadd.f32 %v2231_v30, %v2211_v0 }
 0x187   :  { %v594_v24 = vpop.permute.xlu0 %593 }
 0x188   :  { %v596_v61 = vpop.permute.xlu1 %595  ;;  %v2234_v16 = vadd.f32 %v594_v24, %v2032_v26  ;;  %v2242_v36 = vsub.f32 %v2032_v26, %v594_v24 }
 0x189   :  { %v618_v50 = vadd.f32 %v596_v61, %v2036_v2  ;;  %v714_v10 = vsub.f32 %v2036_v2, %v596_v61 }
 0x18a   :  { %v2261_v48 = vadd.f32 %v2198_v42, %v2234_v16  ;;  %v689_v19 = vsub.f32 %v2234_v16, %v2198_v42  ;;  %v2268_v32 = vadd.f32 %v2242_v36, %v2198_v42  ;;  %v745_v12 = vsub.f32 %v2242_v36, %v2198_v42 }
 0x18b   :  { %v642_v17 = vadd.f32 %v2147_v54, %v618_v50  ;;  %v690_v59 = vsub.f32 %v618_v50, %v2147_v54  ;;  %v722_v28 = vadd.f32 %v714_v10, %v2147_v54  ;;  %v746_v2 = vsub.f32 %v714_v10, %v2147_v54 }
 0x18f   :  { %v600_v27 = vpop.permute.xlu0 %599  ;;  %v604_v52 = vpop.permute.xlu2 %603 }
 0x190   :  { %v620_v53 = vadd.f32 %v600_v27, %v2059_v47  ;;  %v2248_v46 = vadd.f32 %v604_v52, %v2123_v37  ;;  %v2251_v54 = vsub.f32 %v2123_v37, %v604_v52  ;;  %v716_v9 = vsub.f32 %v2059_v47, %v600_v27 }
 0x192   :  { %v644_v13 = vadd.f32 %v2111_v7, %v620_v53  ;;  %v2276_v15 = vadd.f32 %v2216_v5, %v2248_v46  ;;  %v2282_v56 = vadd.f32 %v2251_v54, %v2216_v5  ;;  %v692_v61 = vsub.f32 %v620_v53, %v2111_v7 }
 0x197   :  { %v602_v6 = vpop.permute.xlu0 %601  ;;  %v652_v31 = vpop.permute.xlu2 %651 }
 0x198   :  { %v674_v20 = vadd.f32 %v652_v31, %v642_v17  ;;  %v698_v4 = vsub.f32 %v690_v59, %v652_v31  ;;  %v730_v29 = vsub.f32 %v722_v28, %v652_v31  ;;  %v754_v11 = vadd.f32 %v746_v2, %v652_v31 }
 0x199   :  { %v621_v43 = vadd.f32 %v602_v6, %v2091_v44  ;;  %v717_v50 = vsub.f32 %v2091_v44, %v602_v6  ;;  %v724_v31 = vadd.f32 %v716_v9, %v2111_v7  ;;  %v748_v2 = vsub.f32 %v716_v9, %v2111_v7 }
 0x19a   :  { %v682_v1 = vmul.f32 0.5, %v674_v20  ;;  %v706_v37 = vmul.f32 0.5, %v698_v4  ;;  %v738_v40 = vmul.f32 0.5, %v730_v29  ;;  %v762_v24 = vmul.f32 0.5, %v754_v11 }
 0x19b   :  { %v645_v20 = vadd.f32 %v2126_v49, %v621_v43  ;;  %v693_v53 = vsub.f32 %v621_v43, %v2126_v49 }
 0x19c   :  { %v770_v17 = vand.u32 2147483647, %v682_v1  ;;  %v827_v59 = vand.u32 2147483647, %v706_v37  ;;  %v859_v28 = vand.u32 2147483647, %v738_v40  ;;  %v749_v1 = vsub.f32 %v717_v50, %v2126_v49 }
 0x19d   :  { %v891_v11 = vand.u32 2147483647, %v762_v24 }
 0x19e   :  { %v2301_v9 = vsel %vm777_vm2, %v770_v17, 0.0  ;;  %v2304_v40 = vsel %vm777_vm2, %v770_v17, -inf  ;;  %v2307_v24 = vsel %vm777_vm2, %v827_v59, -inf }
 0x19f   :  { %v2222_v33 = vpop.permute.xlu0 %655  ;;  %v608_v27 = vpop.permute.xlu2 %607  ;;  %v2316_v17 = vsel %vm777_vm2, %v891_v11, -inf }
 0x1a0   :  { %v676_v10 = vadd.f32 %v2222_v33, %v644_v13  ;;  %v624_v4 = vadd.f32 %v608_v27, %v2166_v14  ;;  %v700_v29 = vsub.f32 %v692_v61, %v2222_v33  ;;  %v720_v44 = vsub.f32 %v2166_v14, %v608_v27 }
 0x1a1   :  { %v732_v6 = vsub.f32 %v724_v31, %v2222_v33  ;;  %v725_v13 = vadd.f32 %v717_v50, %v2126_v49  ;;  %v756_v7 = vadd.f32 %v748_v2, %v2222_v33  ;;  %v2310_v14 = vsel %vm777_vm2, %v859_v28, -inf }
 0x1a2   :  { %v684_v37 = vmul.f32 0.5, %v676_v10  ;;  %v648_v43 = vadd.f32 %v2172_v63, %v624_v4  ;;  %v708_v27 = vmul.f32 0.5, %v700_v29  ;;  %v696_v50 = vsub.f32 %v624_v4, %v2172_v63 }
 0x1a3   :  { %v752_v33 = vsub.f32 %v720_v44, %v2172_v63  ;;  %v740_v10 = vmul.f32 0.5, %v732_v6  ;;  %v764_v2 = vmul.f32 0.5, %v756_v7  ;;  %v728_v4 = vadd.f32 %v720_v44, %v2172_v63 }
 0x1a4   :  { %v772_v59 = vand.u32 2147483647, %v684_v37 }
 0x1a5   :  { %v861_v47 = vand.u32 2147483647, %v740_v10 }
 0x1a7   :  { %v658_v22 = vpop.permute.xlu0 %657 }
 0x1a8   :  { %v677_v61 = vadd.f32 %v658_v22, %v645_v20  ;;  %v701_v49 = vsub.f32 %v693_v53, %v658_v22  ;;  %v733_v62 = vsub.f32 %v725_v13, %v658_v22  ;;  %v757_v60 = vadd.f32 %v749_v1, %v658_v22 }
 0x1a9   :  { %v829_v53 = vand.u32 2147483647, %v708_v27  ;;  %v893_v13 = vand.u32 2147483647, %v764_v2  ;;  %v662_v27 = vpop.permute.xlu2 %661 }
 0x1aa   :  { %v685_v52 = vmul.f32 0.5, %v677_v61  ;;  %v709_v6 = vmul.f32 0.5, %v701_v49  ;;  %v741_v63 = vmul.f32 0.5, %v733_v62  ;;  %v765_v44 = vmul.f32 0.5, %v757_v60 }
 0x1ac   :  { %v773_v61 = vand.u32 2147483647, %v685_v52  ;;  %v830_v49 = vand.u32 2147483647, %v709_v6  ;;  %v862_v60 = vand.u32 2147483647, %v741_v63 }
 0x1ad   :  { %v894_v52 = vand.u32 2147483647, %v765_v44 }
 0x1ae   :  { %v2348_v6 = vsel %vm777_vm2, %v830_v49, -inf  ;;  %v2370_v49 = vsel %vm777_vm2, %v862_v60, -inf }
 0x1b8   :  { %v664_v31 = vpop.permute.xlu0 %663 }
 0x1b9   :  { %v680_v57 = vadd.f32 %v664_v31, %v648_v43  ;;  %v606_v28 = vpop.permute.xlu1 %605  ;;  %v704_v51 = vsub.f32 %v696_v50, %v664_v31  ;;  %v760_v26 = vadd.f32 %v752_v33, %v664_v31  ;;  %v736_v50 = vsub.f32 %v728_v4, %v664_v31 }
 0x1ba   :  { %v623_v29 = vadd.f32 %v606_v28, %v2174_v21  ;;  %v719_v20 = vsub.f32 %v2174_v21, %v606_v28  ;;  %v2328_v21 = vsel %vm777_vm2, %v772_v59, 0.0  ;;  %v2331_v33 = vsel %vm777_vm2, %v772_v59, -inf }
 0x1bb   :  { %v2323_v7 = vmul.f32 0.5, %v680_v57  ;;  %v712_v43 = vmul.f32 0.5, %v704_v51  ;;  %v768_v10 = vmul.f32 0.5, %v760_v26  ;;  %v2334_v28 = vsel %vm777_vm2, %v829_v53, -inf }
 0x1bc   :  { %v647_v11 = vadd.f32 %v2195_v23, %v623_v29  ;;  %v695_v37 = vsub.f32 %v623_v29, %v2195_v23  ;;  %v727_v22 = vadd.f32 %v719_v20, %v2195_v23  ;;  %v751_v1 = vsub.f32 %v719_v20, %v2195_v23 }
 0x1bd   :  { %v2500_v23 = vand.u32 2147483647, %v2323_v7  ;;  %v2338_v51 = vsel %vm777_vm2, %v861_v47, -inf  ;;  %v833_v31 = vand.u32 2147483647, %v712_v43  ;;  %v744_v4 = vmul.f32 0.5, %v736_v50 }
 0x1be   :  { %v679_v57 = vadd.f32 %v662_v27, %v647_v11  ;;  %v703_v2 = vsub.f32 %v695_v37, %v662_v27  ;;  %v735_v29 = vsub.f32 %v727_v22, %v662_v27  ;;  %v759_v20 = vadd.f32 %v751_v1, %v662_v27 }
 0x1bf   :  { %v2342_v26 = vsel %vm777_vm2, %v773_v61, -inf  ;;  %v2345_v53 = vsel %vm777_vm2, %v893_v13, -inf  ;;  %v897_v11 = vand.u32 2147483647, %v768_v10  ;;  %v2358_v44 = vsel %vm777_vm2, %v2500_v23, -inf }
 0x1c0   :  { %v2350_v37 = vmul.f32 0.5, %v679_v57  ;;  %v711_v47 = vmul.f32 0.5, %v703_v2  ;;  %v743_v1 = vmul.f32 0.5, %v735_v29  ;;  %v767_v63 = vmul.f32 0.5, %v759_v20 }
 0x1c1   :  { %v650_v62 = vpop.permute.xlu1 %649  ;;  %v2361_v13 = vsel %vm777_vm2, %v894_v52, -inf  ;;  %v2364_v43 = vsel %vm777_vm2, %v833_v31, -inf  ;;  %v2367_v27 = vsel %vm777_vm2, %v773_v61, 0.0  ;;  %v865_v50 = vand.u32 2147483647, %v744_v4 }
 0x1c2   :  { %v673_v59 = vadd.f32 %v650_v62, %v2261_v48  ;;  %v697_v48 = vsub.f32 %v689_v19, %v650_v62  ;;  %v729_v16 = vsub.f32 %v2268_v32, %v650_v62  ;;  %v753_v19 = vadd.f32 %v745_v12, %v650_v62 }
 0x1c3   :  { %v775_v57 = vand.u32 2147483647, %v2350_v37  ;;  %v832_v2 = vand.u32 2147483647, %v711_v47  ;;  %v813_v29 = vmax.f32 %v2331_v33, %v2358_v44  ;;  %v2380_v61 = vsel %vm777_vm2, %v897_v11, -inf }
 0x1c4   :  { %v681_v22 = vmul.f32 0.5, %v673_v59  ;;  %v864_v20 = vand.u32 2147483647, %v743_v1  ;;  %v896_v60 = vand.u32 2147483647, %v767_v63  ;;  %v705_v52 = vmul.f32 0.5, %v697_v48 }
 0x1c5   :  { %v845_v32 = vmax.f32 %v2334_v28, %v2364_v43  ;;  %v2549_v62 = vsub.f32 %v2231_v30, %v2211_v0  ;;  %v737_v4 = vmul.f32 0.5, %v729_v16  ;;  %v761_v11 = vmul.f32 0.5, %v753_v19 }
 0x1c6   :  { %v769_v10 = vand.u32 2147483647, %v681_v22  ;;  %v2394_v22 = vsel %vm777_vm2, %v865_v50, -inf  ;;  %v826_v23 = vand.u32 2147483647, %v705_v52  ;;  %v810_v41 = vsel %vm777_vm2, %v775_v57, -inf }
 0x1c7   :  { %v909_v0 = vmax.f32 %v2345_v53, %v2380_v61  ;;  %v842_v30 = vsel %vm777_vm2, %v832_v2, -inf  ;;  %v906_v50 = vsel %vm777_vm2, %v896_v60, -inf  ;;  %v874_v16 = vsel %vm777_vm2, %v864_v20, -inf }
 0x1c8   :  { %v778_v47 = vsel %vm777_vm2, %v769_v10, 0.0  ;;  %v877_v53 = vmax.f32 %v2338_v51, %v2394_v22  ;;  %v834_v20 = vsel %vm777_vm2, %v826_v23, -inf  ;;  %v2552_v44 = vand.u32 2147483647, %v2323_v7 }
 0x1c9   :  { %v654_v31 = vpop.permute.xlu1 %653  ;;  %v780_v19 = vadd.f32 %v2301_v9, %v778_v47  ;;  %v2551_v47 = vsub.f32 %v2251_v54, %v2216_v5  ;;  %v2555_v37 = vmax.f32 %v2149_v3, %v2200_v39  ;;  %v2556_v7 = vmax.f32 %v2001_v8, %v2003_v34 }
 0x1ca   :  { %v675_v42 = vadd.f32 %v654_v31, %v2239_v58  ;;  %v699_v36 = vsub.f32 %v691_v25, %v654_v31  ;;  %v731_v12 = vsub.f32 %v2255_v45, %v654_v31  ;;  %v755_v59 = vadd.f32 %v2549_v62, %v654_v31 }
 0x1cb   :  { %v802_v45 = vsel %vm777_vm2, %v769_v10, -inf  ;;  %v791_v28 = vsel %vm777_vm2, %v2552_v44, 0.0 }
 0x1cc   :  { %v683_v1 = vmul.f32 0.5, %v675_v42  ;;  %v707_v63 = vmul.f32 0.5, %v699_v36  ;;  %v739_v58 = vmul.f32 0.5, %v731_v12  ;;  %v763_v48 = vmul.f32 0.5, %v755_v59 }
 0x1cd   :  { %v858_v36 = vand.u32 2147483647, %v737_v4  ;;  %v890_v12 = vand.u32 2147483647, %v761_v11  ;;  %v807_v60 = vmax.f32 %v802_v45, %v2342_v26  ;;  %v2550_v59 = vsub.f32 %v2248_v46, %v2216_v5 }
 0x1ce   :  { %v771_v25 = vand.u32 2147483647, %v683_v1  ;;  %v828_v31 = vand.u32 2147483647, %v707_v63  ;;  %v860_v52 = vand.u32 2147483647, %v739_v58 }
 0x1cf   :  { %v892_v42 = vand.u32 2147483647, %v763_v48  ;;  %v866_v5 = vsel %vm777_vm2, %v858_v36, -inf }
 0x1d0   :  { %v781_v62 = vsel %vm777_vm2, %v771_v25, 0.0  ;;  %v804_v10 = vsel %vm777_vm2, %v771_v25, -inf  ;;  %v836_v1 = vsel %vm777_vm2, %v828_v31, -inf  ;;  %v868_v23 = vsel %vm777_vm2, %v860_v52, -inf }
 0x1d1   :  { %v782_v2 = vadd.f32 %v781_v62, %v780_v19  ;;  %v660_v61 = vpop.permute.xlu1 %659  ;;  %v900_v22 = vsel %vm777_vm2, %v892_v42, -inf  ;;  %v811_v46 = vmax.f32 %v804_v10, %v810_v41  ;;  %v898_v25 = vsel %vm777_vm2, %v890_v12, -inf }
 0x1d2   :  { %v678_v9 = vadd.f32 %v660_v61, %v2276_v15  ;;  %v702_v4 = vsub.f32 %v2550_v59, %v660_v61  ;;  %v734_v11 = vsub.f32 %v2282_v56, %v660_v61  ;;  %v758_v51 = vadd.f32 %v2551_v47, %v660_v61 }
 0x1d3   :  { %v784_v26 = vadd.f32 %v2328_v21, %v782_v2  ;;  %v839_v56 = vmax.f32 %v834_v20, %v2348_v6  ;;  %v843_v42 = vmax.f32 %v836_v1, %v842_v30  ;;  %v907_v62 = vmax.f32 %v900_v22, %v906_v50 }
 0x1d4   :  { %v686_v63 = vmul.f32 0.5, %v678_v9  ;;  %v710_v15 = vmul.f32 0.5, %v702_v4  ;;  %v742_v58 = vmul.f32 0.5, %v734_v11  ;;  %v766_v48 = vmul.f32 0.5, %v758_v51 }
 0x1d5   :  { %v786_v21 = vadd.f32 %v2367_v27, %v784_v26  ;;  %v875_v52 = vmax.f32 %v868_v23, %v874_v16  ;;  %v903_v50 = vmax.f32 %v898_v25, %v2361_v13  ;;  %v871_v16 = vmax.f32 %v866_v5, %v2370_v49 }
 0x1d6   :  { %v774_v54 = vand.u32 2147483647, %v686_v63  ;;  %v831_v45 = vand.u32 2147483647, %v710_v15  ;;  %v863_v19 = vand.u32 2147483647, %v742_v58  ;;  %v815_v59 = vmax.f32 %v811_v46, %v813_v29 }
 0x1d7   :  { %v895_v31 = vand.u32 2147483647, %v766_v48  ;;  %v911_v11 = vmax.f32 %v907_v62, %v909_v0  ;;  %v879_v13 = vmax.f32 %v875_v52, %v877_v53  ;;  %v2553_v29 = vmax.f32 %v1988_v18, %v1977_v35 }
 0x1d8   :  { %v808_v2 = vsel %vm777_vm2, %v774_v54, -inf  ;;  %v840_v61 = vsel %vm777_vm2, %v831_v45, -inf  ;;  %v787_v41 = vsel %vm777_vm2, %v774_v54, 0.0  ;;  %v872_v12 = vsel %vm777_vm2, %v863_v19, -inf }
 0x1d9   :  { %v809_v6 = vmax.f32 %v2304_v40, %v808_v2  ;;  %v904_v36 = vsel %vm777_vm2, %v895_v31, -inf  ;;  %v841_v10 = vmax.f32 %v2307_v24, %v840_v61  ;;  %v788_v30 = vadd.f32 %v787_v41, %v786_v21 }
 0x1da   :  { %v905_v27 = vmax.f32 %v2316_v17, %v904_v36  ;;  %v873_v20 = vmax.f32 %v2310_v14, %v872_v12  ;;  %v847_v40 = vmax.f32 %v843_v42, %v845_v32  ;;  %v789_v14 = vsel %vm777_vm2, %v775_v57, 0.0 }
 0x1db   :  { %v814_v9 = vmax.f32 %v807_v60, %v809_v6  ;;  %v846_v4 = vmax.f32 %v839_v56, %v841_v10  ;;  %v790_v33 = vadd.f32 %v789_v14, %v788_v30  ;;  %v2554_v32 = vmax.f32 %v1993_v55, %v1979_v38 }
 0x1dc   :  { %v910_v24 = vmax.f32 %v903_v50, %v905_v27  ;;  %v878_v47 = vmax.f32 %v871_v16, %v873_v20 }
 0x1dd   :  { %v816_v51 = vmax.f32 %v814_v9, %v815_v59  ;;  %v848_v17 = vmax.f32 %v846_v4, %v847_v40  ;;  %v792_v43 = vadd.f32 %v791_v28, %v790_v33 }
 0x1de   :  { %v912_v22 = vmax.f32 %v910_v24, %v911_v11  ;;  %v880_v49 = vmax.f32 %v878_v47, %v879_v13 }
 0x1df   :  { %817 = vmax.xlane.f32.xlu2 %v816_v51  ;;  %849 = vmax.xlane.f32.xlu0 %v848_v17 }
 0x1e0   :  { %913 = vmax.xlane.f32.xlu1 %v912_v22 }
 0x1e3   :  { %v979_v57 = vpop.xlane.xlu0 %978 }
 0x1e4   :  { %v980_v26 = vrot.slane %v979_v57, 4 }
 0x1e6   :  { %v981_v15 = vmax.f32 %v979_v57, %v980_v26 }
 0x1e7   :  { %881 = vmax.xlane.f32.xlu2 %v880_v49  ;;  %1123 = vmax.xlane.f32.xlu0 %v2553_v29 }
 0x1e8   :  { %793 = vadd.xlane.f32.xlu1 %v792_v43  ;;  %v982_v45 = vrot.slane %v981_v15, 2 }
 0x1e9   :  { %v947_v0 = vpop.xlane.xlu2 %946 }
 0x1ea   :  { %v948_v63 = vrot.slane %v947_v0, 4  ;;  %v983_v10 = vmax.f32 %v981_v15, %v982_v45 }
 0x1ec   :  { %v949_v48 = vmax.f32 %v947_v0, %v948_v63  ;;  %v984_v28 = vrot.slane %v983_v10, 1 }
 0x1ee   :  { %v950_v31 = vrot.slane %v949_v48, 2  ;;  %v985_v0 = vmax.f32 %v983_v10, %v984_v28 }
 0x1ef   :  { %1067 = vmax.xlane.f32.xlu2 %v2554_v32 }
 0x1f0   :  { %1010 = vmax.xlane.f32.xlu1 %v2555_v37  ;;  %v951_v20 = vmax.f32 %v949_v48, %v950_v31 }
 0x1f2   :  { %v952_v49 = vrot.slane %v951_v20, 1 }
 0x1f4   :  { %v953_v37 = vmax.f32 %v951_v20, %v952_v49 }
 0x1f8   :  { %1179 = vmax.xlane.f32.xlu1 %v2556_v7 }
 0x252   :  { %v818_v53 = vpop.xlane.xlu2 %817  ;;  %v850_v60 = vpop.xlane.xlu0 %849 }
 0x253   :  { %v819_v1 = vrot.slane %v818_v53, 4  ;;  %v914_v35 = vpop.xlane.xlu1 %913  ;;  %v851_v18 = vrot.slane %v850_v60, 4 }
 0x254   :  { %v915_v23 = vrot.slane %v914_v35, 4 }
 0x255   :  { %v820_v38 = vmax.f32 %v818_v53, %v819_v1  ;;  %v852_v55 = vmax.f32 %v850_v60, %v851_v18 }
 0x256   :  { %v916_v58 = vmax.f32 %v914_v35, %v915_v23 }
 0x257   :  { %v821_v46 = vrot.slane %v820_v38, 2  ;;  %v853_v25 = vrot.slane %v852_v55, 2 }
 0x258   :  { %v917_v19 = vrot.slane %v916_v58, 2 }
 0x259   :  { %v822_v21 = vmax.f32 %v820_v38, %v821_v46  ;;  %v854_v61 = vmax.f32 %v852_v55, %v853_v25 }
 0x25a   :  { %v882_v3 = vpop.xlane.xlu2 %881  ;;  %v1124_v39 = vpop.xlane.xlu0 %1123  ;;  %v918_v36 = vmax.f32 %v916_v58, %v917_v19  ;;  %v1188_v58 = vlaneseq }
 0x25b   :  { %v794_v8 = vpop.xlane.xlu1 %793  ;;  %v883_v34 = vrot.slane %v882_v3, 4  ;;  %v1125_v5 = vrot.slane %v1124_v39, 4  ;;  %v823_v27 = vrot.slane %v822_v21, 1  ;;  %v855_v40 = vrot.slane %v854_v61, 1 }
 0x25c   :  { %v795_v56 = vrot.slane %v794_v8, 4  ;;  %v919_v13 = vrot.slane %v918_v36, 1 }
 0x25d   :  { %v884_v54 = vmax.f32 %v882_v3, %v883_v34  ;;  %v1126_v2 = vmax.f32 %v1124_v39, %v1125_v5  ;;  %v824_v17 = vmax.f32 %v822_v21, %v823_v27  ;;  %v856_v44 = vmax.f32 %v854_v61, %v855_v40 }
 0x25e   :  { %v796_v42 = vadd.f32 %v795_v56, %v794_v8  ;;  %v920_v29 = vmax.f32 %v918_v36, %v919_v13  ;;  %v1189_v3 = vand.u32 127, %v1188_v58  ;;  %v1191_v39 = vshrl.u32 %v1188_v58, 7 }
 0x25f   :  { %v885_v62 = vrot.slane %v884_v54, 2  ;;  %v1127_v9 = vrot.slane %v1126_v2, 2 }
 0x260   :  { %v797_v52 = vrot.slane %v796_v42, 2  ;;  %vm1192_vm3 = vcmp.eq.s32.totalorder %v1191_v39, 0  ;;  %vm1193_vm4 = vcmp.eq.s32.totalorder %v1189_v3, 0  ;;  %vm1197_vm5 = vcmp.eq.s32.totalorder %v1189_v3, 1 }
 0x261   :  { %v886_v41 = vmax.f32 %v884_v54, %v885_v62  ;;  %v1128_v14 = vmax.f32 %v1126_v2, %v1127_v9  ;;  %vm1201_vm6 = vcmp.eq.s32.totalorder %v1189_v3, 2  ;;  %vm1194_vm7 = vmand %vm1192_vm3, %vm1193_vm4  ;;  %vm1205_vm8 = vcmp.eq.s32.totalorder %v1189_v3, 3 }
 0x262   :  { %v1068_v12 = vpop.xlane.xlu2 %1067  ;;  %v798_v6 = vadd.f32 %v797_v52, %v796_v42  ;;  %vm1198_vm9 = vmand %vm1192_vm3, %vm1197_vm5  ;;  %vm1209_vm10 = vcmp.eq.s32.totalorder %v1189_v3, 4  ;;  %vm1213_vm12 = vcmp.eq.s32.totalorder %v1189_v3, 5  ;;  %vm1217_vm14 = vcmp.eq.s32.totalorder %v1189_v3, 6 }
 0x263   :  { %v1011_v30 = vpop.xlane.xlu1 %1010  ;;  %v1069_v50 = vrot.slane %v1068_v12, 4  ;;  %v887_v16 = vrot.slane %v886_v41, 1  ;;  %v1129_v1 = vrot.slane %v1128_v14, 1  ;;  %vm1202_vm11 = vmand %vm1192_vm3, %vm1201_vm6  ;;  %vm1221_vm2 = vcmp.eq.s32.totalorder %v1189_v3, 7 }
 0x264   :  { %v1012_v59 = vrot.slane %v1011_v30, 4  ;;  %v799_v4 = vrot.slane %v798_v6, 1  ;;  %vm1206_vm13 = vmand %vm1192_vm3, %vm1205_vm8  ;;  %vm1225_vm5 = vcmp.eq.s32.totalorder %v1189_v3, 8  ;;  %vm1233_vm8 = vcmp.eq.s32.totalorder %v1189_v3, 10 }
 0x265   :  { %v1070_v24 = vmax.f32 %v1068_v12, %v1069_v50  ;;  %v888_v22 = vmax.f32 %v886_v41, %v887_v16  ;;  %v1130_v63 = vmax.f32 %v1128_v14, %v1129_v1  ;;  %vm1210_vm15 = vmand %vm1192_vm3, %vm1209_vm10 }
 0x266   :  { %v1013_v11 = vmax.f32 %v1011_v30, %v1012_v59  ;;  %v800_v47 = vadd.f32 %v799_v4, %v798_v6  ;;  %vm1214_vm0 = vmand %vm1192_vm3, %vm1213_vm12 }
 0x267   :  { %v1071_v51 = vrot.slane %v1070_v24, 2  ;;  %vm1218_vm1 = vmand %vm1192_vm3, %vm1217_vm14 }
 0x268   :  { %v1014_v33 = vrot.slane %v1013_v11, 2  ;;  %1255 = vpush %v800_v47  ;;  %vm1222_vm4 = vmand %vm1192_vm3, %vm1221_vm2 }
 0x269   :  { %v1072_v43 = vmax.f32 %v1070_v24, %v1071_v51  ;;  %1257 = vpush %v824_v17  ;;  %vm1226_vm6 = vmand %vm1192_vm3, %vm1225_vm5 }
 0x26a   :  { %1259 = vpush %v856_v44  ;;  %v1015_v32 = vmax.f32 %v1013_v11, %v1014_v33  ;;  %vm1234_vm10 = vmand %vm1192_vm3, %vm1233_vm8 }
 0x26b   :  { %1261 = vpush %v888_v22  ;;  %v1180_v7 = vpop.xlane.xlu1 %1179  ;;  %v1073_v57 = vrot.slane %v1072_v43, 1 }
 0x26c   :  { %1263 = vpush %v920_v29  ;;  %v1181_v53 = vrot.slane %v1180_v7, 4  ;;  %v1016_v60 = vrot.slane %v1015_v32, 1 }
 0x26d   :  { %1265 = vpush %v953_v37  ;;  %v1074_v35 = vmax.f32 %v1072_v43, %v1073_v57 }
 0x26e   :  { %1267 = vpush %v985_v0  ;;  %v1182_v18 = vmax.f32 %v1180_v7, %v1181_v53  ;;  %v1017_v26 = vmax.f32 %v1015_v32, %v1016_v60 }
 0x270   :  { %v1183_v23 = vrot.slane %v1182_v18, 2  ;;  %1269 = vpush %v1017_v26 }
 0x271   :  { %1271 = vpush %v1074_v35 }
 0x272   :  { %v1184_v38 = vmax.f32 %v1182_v18, %v1183_v23  ;;  %1273 = vpush %v1130_v63 }
 0x274   :  { %v1185_v55 = vrot.slane %v1184_v38, 1 }
 0x276   :  { %v1186_v15 = vmax.f32 %v1184_v38, %v1185_v55 }
 0x278   :  { %1275 = vpush %v1186_v15 }
 0x299   :  { %s1256_s15 = spop %1255 }
 0x29a   :  { %v1195_v48 = vstv %s1256_s15  ;;  %s1258_s16 = spop %1257 }
 0x29b   :  { %v1196_v46 = vsel %vm1194_vm7, %v1195_v48, 0.0  ;;  %v1199_v8 = vstv %s1258_s16  ;;  %s1260_s17 = spop %1259  ;;  %vm1229_vm7 = vcmp.eq.s32.totalorder %v1189_v3, 9 }
 0x29c   :  { %v1200_v34 = vsel %vm1198_vm9, %v1199_v8, %v1196_v46  ;;  %v1203_v25 = vstv %s1260_s17  ;;  %s1262_s18 = spop %1261  ;;  %vm1230_vm9 = vmand %vm1192_vm3, %vm1229_vm7 }
 0x29d   :  { %v1204_v56 = vsel %vm1202_vm11, %v1203_v25, %v1200_v34  ;;  %v1207_v5 = vstv %s1262_s18  ;;  %s1264_s19 = spop %1263 }
 0x29e   :  { %v1208_v54 = vsel %vm1206_vm13, %v1207_v5, %v1204_v56  ;;  %v1211_v45 = vstv %s1264_s19  ;;  %s1266_s20 = spop %1265 }
 0x29f   :  { %v1212_v19 = vsel %vm1210_vm15, %v1211_v45, %v1208_v54  ;;  %v1215_v42 = vstv %s1266_s20  ;;  %s1268_s21 = spop %1267 }
 0x2a0   :  { %v1216_v31 = vsel %vm1214_vm0, %v1215_v42, %v1212_v19  ;;  %v1219_v62 = vstv %s1268_s21 }
 0x2a1   :  { %v1220_v21 = vsel %vm1218_vm1, %v1219_v62, %v1216_v31  ;;  %s1270_s22 = spop %1269 }
 0x2a2   :  { %v1223_v52 = vstv %s1270_s22  ;;  %s1272_s23 = spop %1271 }
 0x2a3   :  { %v1224_v2 = vsel %vm1222_vm4, %v1223_v52, %v1220_v21  ;;  %v1227_v61 = vstv %s1272_s23  ;;  %s1274_s24 = spop %1273 }
 0x2a4   :  { %v1228_v41 = vsel %vm1226_vm6, %v1227_v61, %v1224_v2  ;;  %v1231_v12 = vstv %s1274_s24 }
 0x2a5   :  { %v1232_v6 = vsel %vm1230_vm9, %v1231_v12, %v1228_v41 }
 0x2a9   :  { %s1276_s30 = spop %1275 }
 0x2aa   :  { %v1235_v36 = vstv %s1276_s30 }
 0x2ab   :  { %v1236_v10 = vsel %vm1234_vm10, %v1235_v36, %v1232_v6 }
 0x2ac   :  { %1237 = vst [vmem:[#allocation5] sm:$0xff] %v1236_v10 }
 0x2ad   :  { %1248 = dma.vmem_to_hbm [thread:$0]  %s1244_s26, 128, %s1246_s29, [#allocation4]  }
 0x2ae   :  { %1334 = dma.done.wait [#allocation4], 128  }
 0x2af   :  { %1335 = vsyncadd [#allocation4], 4294967168 }
 0x2b0   :  { %1253 = vsyncpa [#allocation3], 1 }
 0x2b1   :  { %1254 = vsyncpa [#allocation4], 1 }

</bundles_post_ra>
